<compile_context>
chip_gen: v5e
topology: v5e:2x2
jax: 0.10.0
libtpu: 0.0.40
codegen_flags: <defaults>
</compile_context>

<pallas_src>
import functools

import jax
import jax.numpy as jnp
from jax import lax
from jax.experimental import pallas as pl
from jax.experimental.pallas import tpu as pltpu

IMG_SIZE = 128
P = IMG_SIZE * IMG_SIZE
PARAS = (588.03, 587.07, 320.0, 240.0)   # fx, fy, px, py
INV_FX = 1.0 / PARAS[0]
INV_FY = 1.0 / PARAS[1]
FLIP = 1.0
SAMPLE_NUM = 1024
VERT_SENTINEL = 1.0e4                    # padded verts end up ~3e8 away (sq. L2)


# ---------------------------------------------------------------------------
# Fused Pallas kernel: uvd(normalized) -> xyz(normalized) -> symmetric chamfer
# (pytorch3d defaults: squared L2, point_reduction="mean", batch_reduction="mean").
# ---------------------------------------------------------------------------
def _fused_xyz_chamfer_kernel(params_ref, uvd_ref, verts_ref, loss_ref, *,
                              n_batch, n_valid, sample_num):
    # params_ref: (B, 13) f32 SMEM = [cx, cy, cz, sz/2, 2/sx, 2/sy, 2/sz,
    #                                 m00, m01, m02, m10, m11, m12]
    # uvd_ref:    (B, 3, S)  f32 VMEM sampled normalized (u, v, d) points
    # verts_ref:  (B, Vp, 3) f32 VMEM verts, rows >= n_valid are sentinel-padded
    # loss_ref:   (1,) f32 SMEM scalar output
    inv_n = 1.0 / sample_num
    inv_v = 1.0 / n_valid
    inv_b = 1.0 / n_batch
    vp = verts_ref.shape[1]

    # vert-row validity mask, hoisted out of the batch loop
    row_id = lax.broadcasted_iota(jnp.int32, (vp, 1), 0)
    valid = row_id < n_valid

    def body(b, acc):
        uvd = uvd_ref[b]                       # (3, S)
        verts = verts_ref[b]                   # (Vp, 3)

        u_n = uvd[0:1, :]                      # (1, S) normalized u (mesh_y / column)
        v_n = uvd[1:2, :]                      # (1, S) normalized v (mesh_x / row)
        d_n = uvd[2:3, :]                      # (1, S) normalized depth

        cx = params_ref[b, 0]
        cy = params_ref[b, 1]
        cz = params_ref[b, 2]
        half_sz = params_ref[b, 3]
        inv_sx = params_ref[b, 4]
        inv_sy = params_ref[b, 5]
        inv_sz = params_ref[b, 6]
        m00 = params_ref[b, 7]
        m01 = params_ref[b, 8]
        m02 = params_ref[b, 9]
        m10 = params_ref[b, 10]
        m11 = params_ref[b, 11]
        m12 = params_ref[b, 12]

        # un-normalize uv / depth
        u = (u_n + 1.0) * (IMG_SIZE * 0.5)
        v = (v_n + 1.0) * (IMG_SIZE * 0.5)
        d = d_n * half_sz + cz

        # apply M^{-1} to [u, v, 1] (first two rows, like get_trans_points)
        u_w = m00 * u + m01 * v + m02
        v_w = m10 * u + m11 * v + m12

        # pointsImgTo3D + re-normalize around crop center / cube size
        xn = ((u_w - PARAS[2]) * d * INV_FX - cx) * inv_sx    # (1, S)
        yn = (FLIP * (v_w - PARAS[3]) * d * INV_FY - cy) * inv_sy
        zn = (d - cz) * inv_sz

        # verts columns in the layout we consume (no in-kernel transpose)
        vx = verts[:, 0:1]                     # (Vp, 1)
        vy = verts[:, 1:2]
        vz = verts[:, 2:3]

        # pairwise squared distances, one fused VPU expression (no MXU, no zeros init)
        dx = vx - xn
        dy = vy - yn
        dz = vz - zn
        dmat = dx * dx + dy * dy + dz * dz      # (Vp, S)

        # point -> nearest vert: sentinel-padded rows can never win the min
        cham_x = jnp.sum(jnp.min(dmat, axis=0, keepdims=True)) * inv_n
        # vert -> nearest point: only the V real verts contribute
        min_y = jnp.min(dmat, axis=1, keepdims=True)           # (Vp, 1)
        cham_y = jnp.sum(jnp.where(valid, min_y, 0.0)) * inv_v

        return acc + (cham_x + cham_y)

    total = lax.fori_loop(0, n_batch, body, jnp.float32(0.0))
    loss_ref[0] = total * inv_b


def fused_surface_loss(uvd, verts_padded, params, n_valid):
    """uvd: (B,3,S) f32; verts_padded: (B,Vp,3) f32; params: (B,13) f32."""
    B, _, S = uvd.shape
    kernel = functools.partial(_fused_xyz_chamfer_kernel,
                               n_batch=B, n_valid=n_valid, sample_num=S)
    loss = pl.pallas_call(
        kernel,
        out_shape=jax.ShapeDtypeStruct((1,), jnp.float32),
        in_specs=[
            pl.BlockSpec(memory_space=pltpu.MemorySpace.SMEM),   # params (B,13)
            pl.BlockSpec(memory_space=pltpu.MemorySpace.VMEM),   # uvd    (B,3,S)
            pl.BlockSpec(memory_space=pltpu.MemorySpace.VMEM),   # verts  (B,Vp,3)
        ],
        out_specs=pl.BlockSpec(memory_space=pltpu.MemorySpace.SMEM),
    )(params, uvd, verts_padded)
    return loss[0]


# ---------------------------------------------------------------------------
# Glue (plain JAX): nearest resize, mask, sample-FIRST valid-point selection.
# ---------------------------------------------------------------------------
def _nearest_resize_nchw(img, out_h, out_w):
    # PyTorch F.interpolate(mode='nearest'): src_idx = floor(dst_idx * in / out)
    _, _, H, W = img.shape
    rows = (jnp.arange(out_h) * H // out_h).astype(jnp.int32)
    cols = (jnp.arange(out_w) * W // out_w).astype(jnp.int32)
    return jnp.take(jnp.take(img, rows, axis=2), cols, axis=3)


def _sample_uvd(real, sample_num=SAMPLE_NUM):
    """Pick `sample_num` valid pixels per batch element, return their normalized
    (u, v, d) as (B, 3, S). Only these points are transformed (sample-first)."""
    B = real.shape[0]
    img_rs = _nearest_resize_nchw(real, IMG_SIZE, IMG_SIZE)     # (B,1,128,128)
    depth = img_rs.reshape(B, P).astype(jnp.float32)
    mask = depth <= 0.99                                        # torch: .le(0.99)

    # O(P) prefix sum + binary search instead of an O(P log P) argsort.
    # TODO(synk): torch uses masked_select (data-dependent shape) + torch.multinomial
    # (random sampling w/o replacement) and an early "return verts" when fewer than
    # 2 valid points exist; replaced by a deterministic, shape-static selection
    # (evenly spaced ranks if enough valid points, modular repeat otherwise).
    mask_i = mask.astype(jnp.int32)
    csum = jnp.cumsum(mask_i, axis=1)                           # (B, P)
    count = jnp.maximum(csum[:, -1], 1)                         # (B,)
    k = jnp.arange(sample_num, dtype=jnp.int32)
    ranks = jnp.where(count[:, None] >= sample_num,
                      (k[None, :] * count[:, None]) // sample_num,
                      k[None, :] % count[:, None])              # (B, S)
    sel = jax.vmap(lambda c, t: jnp.searchsorted(c, t, side='left'))(
        csum, ranks + 1)                                        # (B, S)
    sel = jnp.minimum(sel, P - 1).astype(jnp.int32)

    d_s = jnp.take_along_axis(depth, sel, axis=1)               # (B, S)
    col = (sel % IMG_SIZE).astype(jnp.float32)                  # image x (u)
    row = (sel // IMG_SIZE).astype(jnp.float32)                 # image y (v)
    u_n = 2.0 * col / (IMG_SIZE - 1.0) - 1.0                    # channel 0 (mesh_y)
    v_n = 2.0 * row / (IMG_SIZE - 1.0) - 1.0                    # channel 1 (mesh_x)
    return jnp.stack([u_n, v_n, d_s], axis=1)                   # (B, 3, S)


@jax.jit
def surface_loss_forward(real, synth, verts, faces, center, M, cube):
    # synth and faces are unused by the reference forward pass.
    del synth, faces
    B, V = verts.shape[0], verts.shape[1]

    uvd = _sample_uvd(real)                                     # (B, 3, 1024)

    # per-batch scalars (reciprocals precomputed once, in XLA, not per point)
    minv = jnp.linalg.inv(M).astype(jnp.float32)                # (B, 3, 3)
    center = center.astype(jnp.float32)
    cube = cube.astype(jnp.float32)
    params = jnp.stack([
        center[:, 0], center[:, 1], center[:, 2],
        cube[:, 2] * 0.5,
        2.0 / cube[:, 0], 2.0 / cube[:, 1], 2.0 / cube[:, 2],
        minv[:, 0, 0], minv[:, 0, 1], minv[:, 0, 2],
        minv[:, 1, 0], minv[:, 1, 1], minv[:, 1, 2],
    ], axis=1)                                                  # (B, 13)

    # sentinel-padded verts in the sublane-major layout the kernel consumes
    Vp = max(8, ((V + 7) // 8) * 8)
    verts_p = jnp.pad(verts.astype(jnp.float32),
                      ((0, 0), (0, Vp - V), (0, 0)),
                      constant_values=VERT_SENTINEL)            # (B, Vp, 3)

    return fused_surface_loss(uvd, verts_p, params, V)


# ---------------------------------------------------------------------------
if __name__ == "__main__":
    key = jax.random.PRNGKey(0)
    B, H, W, V = 2, 32, 32, 64
    k1, k2, k3, k4 = jax.random.split(key, 4)

    # depth-normalized render in [-1, 1] (background would be ~1.0)
    real = jax.random.uniform(k1, (B, 1, H, W), jnp.float32, -1.0, 1.0)
    synth = jax.random.uniform(k2, (B, 1, H, W), jnp.float32, -1.0, 1.0)
    verts = jax.random.uniform(k3, (B, V, 3), jnp.float32, -1.0, 1.0)
    faces = jnp.zeros((B, 4, 3), jnp.int32)            # unused
    center = jnp.stack([jnp.full((B,), 310.0), jnp.full((B,), 235.0),
                        jnp.full((B,), 500.0)], axis=1).astype(jnp.float32)
    cube = jnp.full((B, 3), 250.0, jnp.float32)
    # deterministic invertible crop/scale affine matrices M
    s = 1.0 + 0.1 * jax.random.uniform(k4, (B,), jnp.float32)
    M = jnp.stack([
        jnp.stack([s, jnp.zeros_like(s), jnp.full_like(s, -20.0)], axis=1),
        jnp.stack([jnp.zeros_like(s), s, jnp.full_like(s, -10.0)], axis=1),
        jnp.stack([jnp.zeros_like(s), jnp.zeros_like(s), jnp.ones_like(s)], axis=1),
    ], axis=1)                                         # (B, 3, 3)

    loss = surface_loss_forward(real, synth, verts, faces, center, M, cube)
    loss = jax.block_until_ready(loss)
    assert jnp.isfinite(loss)
    print("KERNEL_OK")
</pallas_src>

<mosaic_0001>
module attributes {stable_mosaic.version = 11 : i64} {
  func.func @_fused_xyz_chamfer_kernel(%arg0: memref<2x13xf32, #tpu.memory_space<smem>>, %arg1: memref<2x3x1024xf32, #tpu.memory_space<vmem>>, %arg2: memref<2x64x3xf32, #tpu.memory_space<vmem>>, %arg3: memref<1xf32, #tpu.memory_space<smem>>) attributes {dimension_semantics = [], scalar_prefetch = 0 : i64, scratch_operands = 0 : i64, tpu.core_type = #tpu.core_type<tc>} {
    %0 = tpu.iota {dimensions = array<i32: 0>} : vector<64x1xi32>
    %c64_i32 = arith.constant 64 : i32
    %1 = vector.broadcast %c64_i32 : i32 to vector<64x1xi32>
    %2 = arith.cmpi slt, %0, %1 : vector<64x1xi32>
    %cst = arith.constant 0.000000e+00 : f32
    %c0_i32 = arith.constant 0 : i32
    %c2_i32 = arith.constant 2 : i32
    %3 = arith.addi %c0_i32, %c2_i32 : i32
    %c1_i32 = arith.constant 1 : i32
    %4 = scf.for %arg4 = %c0_i32 to %3 step %c1_i32 iter_args(%arg5 = %cst) -> (f32)  : i32 {
      %7 = arith.index_cast %arg4 : i32 to index
      %c0_2 = arith.constant 0 : index
      %c0_3 = arith.constant 0 : index
      %8 = vector.load %arg1[%7, %c0_2, %c0_3] : memref<2x3x1024xf32, #tpu.memory_space<vmem>>, vector<1x3x1024xf32>
      %9 = vector.shape_cast %8 : vector<1x3x1024xf32> to vector<3x1024xf32>
      %10 = arith.index_cast %arg4 : i32 to index
      %c0_4 = arith.constant 0 : index
      %c0_5 = arith.constant 0 : index
      %11 = vector.load %arg2[%10, %c0_4, %c0_5] : memref<2x64x3xf32, #tpu.memory_space<vmem>>, vector<1x64x3xf32>
      %12 = vector.shape_cast %11 : vector<1x64x3xf32> to vector<64x3xf32>
      %13 = vector.extract_strided_slice %9 {offsets = [0, 0], sizes = [1, 1024], strides = [1, 1]} : vector<3x1024xf32> to vector<1x1024xf32>
      %14 = vector.extract_strided_slice %9 {offsets = [1, 0], sizes = [1, 1024], strides = [1, 1]} : vector<3x1024xf32> to vector<1x1024xf32>
      %15 = vector.extract_strided_slice %9 {offsets = [2, 0], sizes = [1, 1024], strides = [1, 1]} : vector<3x1024xf32> to vector<1x1024xf32>
      %16 = arith.index_cast %arg4 : i32 to index
      %c0_6 = arith.constant 0 : index
      %17 = memref.load %arg0[%16, %c0_6] : memref<2x13xf32, #tpu.memory_space<smem>>
      %18 = arith.index_cast %arg4 : i32 to index
      %c1 = arith.constant 1 : index
      %19 = memref.load %arg0[%18, %c1] : memref<2x13xf32, #tpu.memory_space<smem>>
      %20 = arith.index_cast %arg4 : i32 to index
      %c2 = arith.constant 2 : index
      %21 = memref.load %arg0[%20, %c2] : memref<2x13xf32, #tpu.memory_space<smem>>
      %22 = arith.index_cast %arg4 : i32 to index
      %c3 = arith.constant 3 : index
      %23 = memref.load %arg0[%22, %c3] : memref<2x13xf32, #tpu.memory_space<smem>>
      %24 = arith.index_cast %arg4 : i32 to index
      %c4 = arith.constant 4 : index
      %25 = memref.load %arg0[%24, %c4] : memref<2x13xf32, #tpu.memory_space<smem>>
      %26 = arith.index_cast %arg4 : i32 to index
      %c5 = arith.constant 5 : index
      %27 = memref.load %arg0[%26, %c5] : memref<2x13xf32, #tpu.memory_space<smem>>
      %28 = arith.index_cast %arg4 : i32 to index
      %c6 = arith.constant 6 : index
      %29 = memref.load %arg0[%28, %c6] : memref<2x13xf32, #tpu.memory_space<smem>>
      %30 = arith.index_cast %arg4 : i32 to index
      %c7 = arith.constant 7 : index
      %31 = memref.load %arg0[%30, %c7] : memref<2x13xf32, #tpu.memory_space<smem>>
      %32 = arith.index_cast %arg4 : i32 to index
      %c8 = arith.constant 8 : index
      %33 = memref.load %arg0[%32, %c8] : memref<2x13xf32, #tpu.memory_space<smem>>
      %34 = arith.index_cast %arg4 : i32 to index
      %c9 = arith.constant 9 : index
      %35 = memref.load %arg0[%34, %c9] : memref<2x13xf32, #tpu.memory_space<smem>>
      %36 = arith.index_cast %arg4 : i32 to index
      %c10 = arith.constant 10 : index
      %37 = memref.load %arg0[%36, %c10] : memref<2x13xf32, #tpu.memory_space<smem>>
      %38 = arith.index_cast %arg4 : i32 to index
      %c11 = arith.constant 11 : index
      %39 = memref.load %arg0[%38, %c11] : memref<2x13xf32, #tpu.memory_space<smem>>
      %40 = arith.index_cast %arg4 : i32 to index
      %c12 = arith.constant 12 : index
      %41 = memref.load %arg0[%40, %c12] : memref<2x13xf32, #tpu.memory_space<smem>>
      %cst_7 = arith.constant 1.000000e+00 : f32
      %42 = vector.broadcast %cst_7 : f32 to vector<1x1024xf32>
      %43 = arith.addf %13, %42 : vector<1x1024xf32>
      %cst_8 = arith.constant 6.400000e+01 : f32
      %44 = vector.broadcast %cst_8 : f32 to vector<1x1024xf32>
      %45 = arith.mulf %43, %44 : vector<1x1024xf32>
      %cst_9 = arith.constant 1.000000e+00 : f32
      %46 = vector.broadcast %cst_9 : f32 to vector<1x1024xf32>
      %47 = arith.addf %14, %46 : vector<1x1024xf32>
      %cst_10 = arith.constant 6.400000e+01 : f32
      %48 = vector.broadcast %cst_10 : f32 to vector<1x1024xf32>
      %49 = arith.mulf %47, %48 : vector<1x1024xf32>
      %50 = vector.broadcast %23 : f32 to vector<1x1024xf32>
      %51 = arith.mulf %15, %50 : vector<1x1024xf32>
      %52 = vector.broadcast %21 : f32 to vector<1x1024xf32>
      %53 = arith.addf %51, %52 : vector<1x1024xf32>
      %54 = vector.broadcast %31 : f32 to vector<1x1024xf32>
      %55 = arith.mulf %54, %45 : vector<1x1024xf32>
      %56 = vector.broadcast %33 : f32 to vector<1x1024xf32>
      %57 = arith.mulf %56, %49 : vector<1x1024xf32>
      %58 = arith.addf %55, %57 : vector<1x1024xf32>
      %59 = vector.broadcast %35 : f32 to vector<1x1024xf32>
      %60 = arith.addf %58, %59 : vector<1x1024xf32>
      %61 = vector.broadcast %37 : f32 to vector<1x1024xf32>
      %62 = arith.mulf %61, %45 : vector<1x1024xf32>
      %63 = vector.broadcast %39 : f32 to vector<1x1024xf32>
      %64 = arith.mulf %63, %49 : vector<1x1024xf32>
      %65 = arith.addf %62, %64 : vector<1x1024xf32>
      %66 = vector.broadcast %41 : f32 to vector<1x1024xf32>
      %67 = arith.addf %65, %66 : vector<1x1024xf32>
      %cst_11 = arith.constant 3.200000e+02 : f32
      %68 = vector.broadcast %cst_11 : f32 to vector<1x1024xf32>
      %69 = arith.subf %60, %68 : vector<1x1024xf32>
      %70 = arith.mulf %69, %53 : vector<1x1024xf32>
      %cst_12 = arith.constant 0.00170059351 : f32
      %71 = vector.broadcast %cst_12 : f32 to vector<1x1024xf32>
      %72 = arith.mulf %70, %71 : vector<1x1024xf32>
      %73 = vector.broadcast %17 : f32 to vector<1x1024xf32>
      %74 = arith.subf %72, %73 : vector<1x1024xf32>
      %75 = vector.broadcast %25 : f32 to vector<1x1024xf32>
      %76 = arith.mulf %74, %75 : vector<1x1024xf32>
      %cst_13 = arith.constant 2.400000e+02 : f32
      %77 = vector.broadcast %cst_13 : f32 to vector<1x1024xf32>
      %78 = arith.subf %67, %77 : vector<1x1024xf32>
      %cst_14 = arith.constant 1.000000e+00 : f32
      %79 = vector.broadcast %cst_14 : f32 to vector<1x1024xf32>
      %80 = arith.mulf %79, %78 : vector<1x1024xf32>
      %81 = arith.mulf %80, %53 : vector<1x1024xf32>
      %cst_15 = arith.constant 0.00170337444 : f32
      %82 = vector.broadcast %cst_15 : f32 to vector<1x1024xf32>
      %83 = arith.mulf %81, %82 : vector<1x1024xf32>
      %84 = vector.broadcast %19 : f32 to vector<1x1024xf32>
      %85 = arith.subf %83, %84 : vector<1x1024xf32>
      %86 = vector.broadcast %27 : f32 to vector<1x1024xf32>
      %87 = arith.mulf %85, %86 : vector<1x1024xf32>
      %88 = vector.broadcast %21 : f32 to vector<1x1024xf32>
      %89 = arith.subf %53, %88 : vector<1x1024xf32>
      %90 = vector.broadcast %29 : f32 to vector<1x1024xf32>
      %91 = arith.mulf %89, %90 : vector<1x1024xf32>
      %92 = vector.extract_strided_slice %12 {offsets = [0, 0], sizes = [64, 1], strides = [1, 1]} : vector<64x3xf32> to vector<64x1xf32>
      %93 = vector.extract_strided_slice %12 {offsets = [0, 1], sizes = [64, 1], strides = [1, 1]} : vector<64x3xf32> to vector<64x1xf32>
      %94 = vector.extract_strided_slice %12 {offsets = [0, 2], sizes = [64, 1], strides = [1, 1]} : vector<64x3xf32> to vector<64x1xf32>
      %95 = vector.broadcast %92 : vector<64x1xf32> to vector<64x1024xf32>
      %96 = vector.broadcast %76 : vector<1x1024xf32> to vector<64x1024xf32>
      %97 = arith.subf %95, %96 : vector<64x1024xf32>
      %98 = vector.broadcast %93 : vector<64x1xf32> to vector<64x1024xf32>
      %99 = vector.broadcast %87 : vector<1x1024xf32> to vector<64x1024xf32>
      %100 = arith.subf %98, %99 : vector<64x1024xf32>
      %101 = vector.broadcast %94 : vector<64x1xf32> to vector<64x1024xf32>
      %102 = vector.broadcast %91 : vector<1x1024xf32> to vector<64x1024xf32>
      %103 = arith.subf %101, %102 : vector<64x1024xf32>
      %104 = arith.mulf %97, %97 : vector<64x1024xf32>
      %105 = arith.mulf %100, %100 : vector<64x1024xf32>
      %106 = arith.addf %104, %105 : vector<64x1024xf32>
      %107 = arith.mulf %103, %103 : vector<64x1024xf32>
      %108 = arith.addf %106, %107 : vector<64x1024xf32>
      %cst_16 = arith.constant dense<0x7F800000> : vector<1024xf32>
      %109 = vector.multi_reduction <minimumf>, %108, %cst_16 [0] : vector<64x1024xf32> to vector<1024xf32>
      %110 = vector.shape_cast %109 : vector<1024xf32> to vector<1x1024xf32>
      %111 = vector.shape_cast %110 : vector<1x1024xf32> to vector<1x1x1024xf32>
      %cst_17 = arith.constant dense<0.000000e+00> : vector<1xf32>
      %112 = vector.multi_reduction <add>, %111, %cst_17 [1, 2] : vector<1x1x1024xf32> to vector<1xf32>
      %113 = vector.shape_cast %112 : vector<1xf32> to vector<1x1x1xf32>
      %114 = vector.extract %113[0, 0, 0] : f32 from vector<1x1x1xf32>
      %cst_18 = arith.constant 9.765625E-4 : f32
      %115 = arith.mulf %114, %cst_18 : f32
      %cst_19 = arith.constant dense<0x7F800000> : vector<64xf32>
      %116 = vector.multi_reduction <minimumf>, %108, %cst_19 [1] : vector<64x1024xf32> to vector<64xf32>
      %117 = vector.shape_cast %116 : vector<64xf32> to vector<64x1xf32>
      %cst_20 = arith.constant 0.000000e+00 : f32
      %118 = vector.broadcast %cst_20 : f32 to vector<64x1xf32>
      %119 = arith.select %2, %117, %118 : vector<64x1xi1>, vector<64x1xf32>
      %120 = vector.shape_cast %119 : vector<64x1xf32> to vector<1x64x1xf32>
      %cst_21 = arith.constant dense<0.000000e+00> : vector<1xf32>
      %121 = vector.multi_reduction <add>, %120, %cst_21 [1, 2] : vector<1x64x1xf32> to vector<1xf32>
      %122 = vector.shape_cast %121 : vector<1xf32> to vector<1x1x1xf32>
      %123 = vector.extract %122[0, 0, 0] : f32 from vector<1x1x1xf32>
      %cst_22 = arith.constant 1.562500e-02 : f32
      %124 = arith.mulf %123, %cst_22 : f32
      %125 = arith.addf %115, %124 : f32
      %126 = arith.addf %arg5, %125 : f32
      scf.yield %126 : f32
    }
    %c2_i32_0 = arith.constant 2 : i32
    %cst_1 = arith.constant 5.000000e-01 : f32
    %5 = arith.mulf %4, %cst_1 : f32
    %c0 = arith.constant 0 : index
    %6 = memref.load %arg3[%c0] : memref<1xf32, #tpu.memory_space<smem>>
    memref.store %5, %arg3[%c0] : memref<1xf32, #tpu.memory_space<smem>>
    return
  }
}

</mosaic_0001>

<bundles_post_ra>
// kernel: custom-call.22
= control target key start
LH: loop header
LB: loop body
LE: loop exit
PB: predicated region body
PF: predicated region fallthrough
CT: control target
= control target key end

     0   :  { %s6_s0 = inlined_call_operand.vmem [shape: u32[2,1024], index: 0, kind: output, shape index: {}]  }

// kernel: squeeze.11
= control target key start
LH: loop header
LB: loop body
LE: loop exit
PB: predicated region body
PF: predicated region fallthrough
CT: control target
= control target key end

     0   :  { %s107_s0 = inlined_call_operand.vmem [shape: s32[2048], index: 0, kind: input, shape index: {}]   ;;  %s108_s1 = inlined_call_operand.vmem [shape: s32[2,1024], index: 1, kind: output, shape index: {}]  }
   0x1   :  { %v2_v0 = vld [vmem:[%s107_s0] sm:$0xff]   ;;  %v59_v1 = vld [vmem:[%s107_s0 + $0x8] sm:$0xff]  }
   0x2   :  { %3 = vst [vmem:[#allocation0] ss:$8 sm:$0xf] %v2_v0  }
   0x3   :  { %4 = vst [vmem:[#allocation0] ss:$8 sm:$0xf0] %v2_v0  }
   0x4   :  { %8 = vst [vmem:[#allocation0 + $0x1] ss:$8 sm:$0xf] %v59_v1  }
   0x5   :  { %10 = vst [vmem:[#allocation0 + $0x1] ss:$8 sm:$0xf0] %v59_v1  }
   0xb   :  { %v13_v2 = vld [vmem:[#allocation0] sm:$0x3]  ;;  %v18_v3 = vld [vmem:[#allocation0 + $0x8] sm:$0x3]  ;;  %v24_v4 = vld [vmem:[#allocation0 + $0x10] sm:$0x3] }
   0xc   :  { %16 = vst [vmem:[%s108_s1] sm:$0x3] %v13_v2  ;;  %v30_v5 = vld [vmem:[#allocation0 + $0x18] sm:$0x3]  ;;  %v36_v6 = vld [vmem:[#allocation0 + $0x20] sm:$0x3] }
   0xd   :  { %60 = vst [vmem:[%s108_s1 + $0x2] sm:$0x3] %v18_v3  ;;  %v42_v7 = vld [vmem:[#allocation0 + $0x28] sm:$0x3]  ;;  %v48_v8 = vld [vmem:[#allocation0 + $0x30] sm:$0x3] }
   0xe   :  { %61 = vst [vmem:[%s108_s1 + $0x4] sm:$0x3] %v24_v4  ;;  %v54_v9 = vld [vmem:[#allocation0 + $0x38] sm:$0x3] }
   0xf   :  { %62 = vst [vmem:[%s108_s1 + $0x6] sm:$0x3] %v30_v5 }
  0x10   :  { %63 = vst [vmem:[%s108_s1 + $0x8] sm:$0x3] %v36_v6 }
  0x11   :  { %64 = vst [vmem:[%s108_s1 + $0xa] sm:$0x3] %v42_v7 }
  0x12   :  { %65 = vst [vmem:[%s108_s1 + $0xc] sm:$0x3] %v48_v8 }
  0x13   :  { %66 = vst [vmem:[%s108_s1 + $0xe] sm:$0x3] %v54_v9 }

// kernel: custom-call.11
= control target key start
LH: loop header
LB: loop body
LE: loop exit
PB: predicated region body
PF: predicated region fallthrough
CT: control target
= control target key end

     0   :  { %5 = vsyncpa [#allocation6], 0  ;;  %s911_s0 = inlined_call_operand.vmem [shape: f32[2,3,3], index: 0, kind: input, shape index: {}]   ;;  %s912_s1 = inlined_call_operand.vmem [shape: f32[2,3,3], index: 1, kind: output, shape index: {0}]   ;;  %s913_s2 = inlined_call_operand.hbm [shape: s32[2,3], index: 2, kind: output, shape index: {1}]   ;;  %s914_s3 = inlined_call_operand.vmem [shape: s32[2,3], index: 3, kind: output, shape index: {2}]  }
   0x1   :  { %7 = vsyncpa [#allocation6 + $0x1], 0  ;;  %s735_s12 = smov 0   ;;  %s737_s13 = smov 0  }
   0x2   :  { %s739_s14 = smov 0   ;;  %s741_s15 = smov 0  }
   0x3 LB: > { %s756_s16 = sadd.s32 4294967295, %s708_s15   ;;  %s571_s17 = sadd.s32 4294967294, %s708_s15   ;;  %s708_s15 = sphi %s741_s15, %s920_s15   ;;  %s704_s14 = sphi %s739_s14, %s919_s14   ;;  %s700_s13 = sphi %s737_s13, %s918_s13   ;;  %s696_s12 = sphi %s735_s12, %s917_s12  }
   0x4   : > { %s760_s18 = sadd.s32 1, %s708_s15   ;;  %s17_s19 = sshrl.u32 %s708_s15, 3 }
   0x5   : > { %s18_s20 = sshrl.u32 %s760_s18, 3  ;;  %s22_s21 = sadd.s32 1, %s704_s14 }
   0x6   : > { %s19_s22 = ssub.s32 %s17_s19, %s18_s20  ;;  %p32_p0 = scmp.ne.s32.totalorder %s704_s14, %s700_s13 }
   0x7   : > { %p20_p1 = scmp.eq.s32.totalorder %s19_s22, 0  ;;  %p33_p2 = scmp.eq.s32.totalorder %s756_s16, 1 }
   0x8   : > { %p38_p3 = scmp.ne.s32.totalorder %s700_s13, %s696_s12  ;;  %p39_p4 = scmp.eq.s32.totalorder %s571_s17, 1 }
   0x9   : > { %s771_s23 = scalar_select %p20_p1, %s704_s14, %s22_s21  }
   0xa   : > { %p773_p5 = por %p33_p2, %p32_p0  ;;  %p777_p6 = por %p39_p4, %p38_p3 }
   0xb   : > { %p573_p7 = scmp.ge.s32.totalorder %s708_s15, 2 }
   0xc   : > { %s85_s26 = sand.u32 (!%p573_p7), 1, %s708_s15   ;;  %s575_s27 = sshll.u32 (!%p573_p7), %s708_s15, 2 }
   0xd   : > { %83 = sbr.rel (%p573_p7) target bundleno = 20 (0x14), region = 16  ;;  %s574_s28 = sshll.u32 (!%p573_p7), %s85_s26, 2 }
   0xe   : > { %s89_s4 = scalar_lea.vmem (!%p573_p7), %s911_s0, %s575_s27  ;;  %s87_s5 = scalar_lea.vmem (!%p573_p7), [#allocation1], %s574_s28 }
  0x12   : > { %v106_v0 = vld [vmem:[%s89_s4] sm:$0xf] }
  0x13   : > { %107 = vst [vmem:[%s87_s5] sm:$0xf] %v106_v0 }
  0x14 PF: > { %p576_p8 = scmp.ge.s32.totalorder %s708_s15, 1  ;;  %p124_p9 = scmp.lt.s32.totalorder %s708_s15, 3 }
  0x16   : > { %p125_p10 = pnand %p576_p8, %p124_p9 }
  0x18   : > { %128 = sbr.rel (%p125_p10) target bundleno = 484 (0x1e4), region = 50 }
  0x1d   : > { %s135_s6 = sand.u32 1, %s756_s16   ;;  %s146_s7 = sand.u32 1, %s700_s13   ;;  %v168_v1 = vlaneseq  ;;  %v714_v4 = vmov 0  }
  0x1e   : > { %s793_s8 = sshll.u32 %s135_s6, 2  ;;  %s797_s9 = sshll.u32 %s146_s7, 1 }
  0x1f   : > { %v800_v2 = vshrl.u32 %v168_v1, 7  ;;  %s137_s10 = scalar_lea.vmem [#allocation1], %s793_s8  ;;  %s163_s11 = sand.u32 7, %s756_s16  }
  0x20   : > { %v157_v3 = vld [vmem:[%s137_s10] sm:$0xf]  ;;  %s805_s17 = scalar_lea.vmem [#allocation4], %s163_s11  ;;  %s141_s19 = scalar_lea.vmem [#allocation3], %s793_s8 }
  0x21   : > { %158 = vst [vmem:[#allocation0] sm:$0xf] %v157_v3  ;;  %s148_s20 = scalar_lea.vmem [#allocation5], %s797_s9  ;;  %s154_s21 = scalar_lea.vmem [#allocation8], %s797_s9 }
  0x22   : > { %172 = vst [vmem:[#allocation9] sm:$0xff] %v800_v2  ;;  %s811_s22 = scalar_lea.vmem [#allocation7], %s163_s11  ;;  %s813_s26 = smov 0  }
  0x23   : > { %167 = vst [vmem:[%s805_s17] sm:$0x1] %v714_v4 }
  0x28   : > { %v161_v5 = vld [vmem:[#allocation0] sm:$0xff] }
  0x29   : > { %162 = vst [vmem:[#allocation2] sm:$0xff] %v161_v5 }
  0x2a LB: >> { %vm188_vm0 = vcmp.lt.s32.totalorder %v800_v2, 3  ;;  %v820_v8 = vstv %s712_s26  ;;  %s229_s27 = ssub.s32 128, %s712_s26  ;;  %v235_v39 = vand.u32 127, %v168_v1  ;;  %s241_s28 = scalar_lea.vmem [#allocation2], %s712_s26  ;;  %v238_v42 = vld [vmem:[%s805_s17] ss:$0 sm:$0xff]  ;;  %s712_s26 = sphi %s813_s26, %s178_s26  }
  0x2b   : >> { %vm187_vm1 = vcmp.ge.s32.totalorder %v800_v2, %v820_v8  ;;  %s247_s4 = scalar_lea.vmem [#allocation9], %s712_s26  ;;  %vm267_vm14 = vcmp.gt.s32.totalorder %v800_v2, %v820_v8  ;;  %s178_s26 = sadd.s32 1, %s712_s26  }
  0x2c   : >> { %vm189_vm3 = vmand %vm187_vm1, %vm188_vm0  ;;  %vm236_vm12 = vcmp.eq.s32.totalorder %v235_v39, %v820_v8  ;;  %v249_v44 = vld [vmem:[%s247_s4] ss:$0 sm:$0xff]  ;;  %p175_p11 = scmp.ge.s32.totalorder %s178_s26, 3  }
  0x2d   : > { %s409_s6 = sshrl.u32 (%p175_p11), %s756_s16, 3  ;;  %s415_s26 = sshll.u32 (%p175_p11), %s148_s20, 4  ;;  %s416_s26 = int_to_ptr.vmem [resolvable:$true] %s415_s26 }
  0x2e   : > { %s852_s10 = sshll.u32 (%p175_p11), %s409_s6, 1  ;;  %s363_s6 = scalar_lea.sflag (%p175_p11), [#allocation6], %s146_s7 }
  0x30   : >> { %v183_v6 = vld [vmem:[#allocation2] sm:$0xff]  ;;  %v243_v40 = vld [vmem:[%s241_s28] ss:$0 sm:$0xff] }
  0x31   : >> { %v184_v7 = vand.u32 2147483647, %v183_v6 }
  0x33   : >> { %vm581_vm2 = vcmp.gt.f32.partialorder %v184_v7, -inf }
  0x34   : >> { %vm191_vm4 = vmand %vm189_vm3, %vm581_vm2 }
  0x35   : >> { %v192_v9 = vsel %vm191_vm4, %v800_v2, %v820_v8  ;;  %v193_v10 = vsel %vm191_vm4, %v184_v7, -inf  ;;  %vm284_vm4 = vmand %vm267_vm14, %vm236_vm12 }
  0x36   : >> { %v194_v11 = vrot.slane %v193_v10, 1  ;;  %v195_v12 = vrot.slane %v192_v9, 1 }
  0x38   : >> { %vm196_vm5 = vcmp.ge.f32.partialorder %v194_v11, %v193_v10  ;;  %v199_v13 = vrot.slane %v194_v11, 1  ;;  %v200_v14 = vrot.slane %v195_v12, 1 }
  0x39   : >> { %v197_v15 = vsel %vm196_vm5, %v194_v11, %v193_v10  ;;  %v198_v16 = vsel %vm196_vm5, %v195_v12, %v192_v9  ;;  %vm259_vm5 = vcmp.gt.s32.totalorder %v235_v39, %v820_v8 }
  0x3a   : >> { %vm201_vm6 = vcmp.ge.f32.partialorder %v199_v13, %v197_v15  ;;  %v204_v17 = vrot.slane %v199_v13, 1  ;;  %v205_v18 = vrot.slane %v200_v14, 1 }
  0x3b   : >> { %v202_v19 = vsel %vm201_vm6, %v199_v13, %v197_v15  ;;  %v203_v20 = vsel %vm201_vm6, %v200_v14, %v198_v16 }
  0x3c   : >> { %vm206_vm7 = vcmp.ge.f32.partialorder %v204_v17, %v202_v19  ;;  %v209_v21 = vrot.slane %v204_v17, 1  ;;  %v210_v22 = vrot.slane %v205_v18, 1 }
  0x3d   : >> { %v207_v23 = vsel %vm206_vm7, %v204_v17, %v202_v19  ;;  %v208_v24 = vsel %vm206_vm7, %v205_v18, %v203_v20 }
  0x3e   : >> { %vm211_vm8 = vcmp.ge.f32.partialorder %v209_v21, %v207_v23  ;;  %v214_v25 = vrot.slane %v209_v21, 1  ;;  %v215_v26 = vrot.slane %v210_v22, 1 }
  0x3f   : >> { %v212_v27 = vsel %vm211_vm8, %v209_v21, %v207_v23  ;;  %v213_v28 = vsel %vm211_vm8, %v210_v22, %v208_v24 }
  0x40   : >> { %vm216_vm9 = vcmp.ge.f32.partialorder %v214_v25, %v212_v27  ;;  %v219_v29 = vrot.slane %v214_v25, 1  ;;  %v220_v30 = vrot.slane %v215_v26, 1 }
  0x41   : >> { %v217_v31 = vsel %vm216_vm9, %v214_v25, %v212_v27  ;;  %v218_v32 = vsel %vm216_vm9, %v215_v26, %v213_v28 }
  0x42   : >> { %vm221_vm10 = vcmp.ge.f32.partialorder %v219_v29, %v217_v31  ;;  %v224_v33 = vrot.slane %v219_v29, 1  ;;  %v225_v34 = vrot.slane %v220_v30, 1 }
  0x43   : >> { %v222_v35 = vsel %vm221_vm10, %v219_v29, %v217_v31  ;;  %v223_v36 = vsel %vm221_vm10, %v220_v30, %v218_v32 }
  0x44   : >> { %vm226_vm11 = vcmp.ge.f32.partialorder %v224_v33, %v222_v35 }
  0x45   : >> { %v228_v37 = vsel %vm226_vm11, %v225_v34, %v223_v36 }
  0x46   : >> { %230 = vrot.lane.b32.xlu0 %v228_v37, %s229_s27 }
  0xb8   : >> { %v231_v38 = vpop.permute.xlu0 %230 }
  0xb9   : >> { %590 = vpush %v231_v38 }
  0xea   : >> { %s591_s29 = spop %590 }
  0xeb   : >> { %v237_v41 = vstv %s591_s29  ;;  %s242_s30 = scalar_lea.vmem [#allocation2], %s591_s29  ;;  %s248_s5 = scalar_lea.vmem [#allocation9], %s591_s29 }
  0xec   : >> { %v244_v43 = vld [vmem:[%s242_s30] ss:$0 sm:$0xff]  ;;  %v239_v46 = vsel %vm236_vm12, %v237_v41, %v238_v42 }
  0xed   : >> { %v250_v45 = vld [vmem:[%s248_s5] ss:$0 sm:$0xff]  ;;  %245 = vst [vmem:[%s242_s30] sm:$0x1] %v243_v40  ;;  %vm253_vm13 = vcmp.ne.f32.partialorder %v244_v43, 0.0  ;;  %v260_v62 = vsel %vm259_vm5, %v244_v43, 0.0 }
  0xee   : >> { %246 = vst [vmem:[%s241_s28] sm:$0x1] %v244_v43  ;;  %vm254_vm15 = vmand %vm236_vm12, %vm253_vm13  ;;  %s413_s28 = scalar_lea.hbm (%p175_p11), %s913_s2, %s852_s10 }
  0xef   : >> { %251 = vst [vmem:[%s248_s5] sm:$0x1] %v249_v44  ;;  %v255_v47 = vsel %vm254_vm15, %v244_v43, 1.0  ;;  %s417_s29 = sshll.u32 (%p175_p11), %s413_s28, 4  ;;  %s418_s29 = int_to_ptr.hbm [resolvable:$true] %s417_s29 }
  0xf0   : >> { %252 = vst [vmem:[%s247_s4] sm:$0x1] %v250_v45  ;;  %v268_v48 = vsel %vm267_vm14, %v255_v47, 1.0  ;;  %s656_s11 = sshra.s32 (%p175_p11), %s418_s29, 4  ;;  %s657_s11 = int_to_ptr.hbm [resolvable:$true] %s656_s11 }
  0xf1   : >> { %640 = vrcp.f32 %v268_v48  ;;  %240 = vst [vmem:[%s805_s17] sm:$0x1] %v239_v46  ;;  %v280_v52 = vand.u32 2147483648, %v268_v48  ;;  %v278_v54 = vand.u32 2147483647, %v268_v48  ;;  %vm274_vm1 = vweird.f32 %v268_v48  ;;  %s585_s17 = sshll.u32 (%p175_p11), %s756_s16, 2  ;;  %s658_s16 = scalar_lea.hbm (%p175_p11), %s657_s11, 2 }
  0xf2   : > { %s372_s5 = scalar_lea.vmem (%p175_p11), %s912_s1, %s585_s17  ;;  %p659_p12 = scmp.ne.s32.totalorder (%p175_p11), %s657_s11, %s658_s16 }
  0xf3   : >> { %v281_v56 = vor.u32 1.1754944e-38, %v280_v52  ;;  %vm279_vm3 = vcmp.eq.f32.partialorder %v278_v54, 8.507059e+37  ;;  %s662_s17 = scalar_lea.hbm (%p175_p11), %s913_s2, 2  ;;  %p663_p1 = scmp.lt.s32.totalorder (%p175_p11), %s657_s11, %s913_s2 }
  0xf4   : > { %p660_p13 = pnand (%p175_p11), %p659_p12, %p773_p5  ;;  %p664_p2 = scmp.lt.s32.totalorder (%p175_p11), %s662_s17, %s658_s16 }
  0xf5   : >> { %v264_v58 = vld [vmem:[#allocation2] sm:$0xff] }
  0xf6   : > { %p661_p0 = pneg (%p175_p11), %p660_p13  ;;  %p665_p3 = por (%p175_p11), %p664_p2, %p663_p1 }
  0xf7   : >> { %v641_v49 = vpop.eup %640  ;;  %v291_v4 = vld [vmem:[#allocation9] sm:$0xff] (%p175_p11) }
  0xf8   : >> { %v270_v50 = vmul.f32 %v641_v49, %v268_v48  ;;  %vm275_vm0 = vweird.f32 %v641_v49  ;;  %v348_v1 = vld [vmem:[#allocation4] sm:$0x3] (%p175_p11)  ;;  %p666_p4 = pnand (%p175_p11), %p665_p3, %p661_p0 }
  0xf9   : >> { %vm276_vm2 = vmor %vm274_vm1, %vm275_vm0  ;;  %351 = vst [vmem:[%s148_s20] sm:$0x3] (%p175_p11), %v348_v1 }
  0xfa   : >> { %v271_v51 = vsub.f32 1.0, %v270_v50 }
  0xfc   : >> { %v272_v53 = vmul.f32 %v641_v49, %v271_v51 }
  0xfe   : >> { %v273_v55 = vadd.f32 %v641_v49, %v272_v53 }
 0x100   : >> { %v277_v57 = vsel %vm276_vm2, %v641_v49, %v273_v55 }
 0x101   : >> { %v282_v59 = vsel %vm279_vm3, %v281_v56, %v277_v57 }
 0x102   : >> { %v283_v60 = vmul.f32 %v282_v59, %v264_v58 }
 0x104   : >> { %v285_v61 = vsel %vm284_vm4, %v283_v60, 0.0 }
 0x105   : >> { %286 = vadd.xlane.f32.xlu0 %v285_v61 }
 0x12e   : > { %307 = vxpose.xlu0.b32.start.end [1/1] (short) (narrow) (%p175_p11), %v291_v4, 8 }
 0x178   : >> { %v287_v63 = vpop.xlane.xlu0 %286 }
 0x179   : >> { %v288_v0 = vmul.f32 %v287_v63, %v260_v62  ;;  %177 = sbr.rel (!%p175_p11) target bundleno = 42 (0x2a), region = 202 }
 0x17b   : >> { %v289_v3 = vsub.f32 %v283_v60, %v288_v0 }
 0x17d   : >> { %290 = vst [vmem:[#allocation2] sm:$0xff] %v289_v3 }
 0x184   : > { %v342_v5 = vld [vmem:[#allocation2] sm:$0xf] }
 0x185   : > { %345 = vst [vmem:[%s141_s19] sm:$0xf] %v342_v5 }
 0x18c   : > { %v389_v2 = vld [vmem:[%s141_s19] sm:$0xf] }
 0x18d   : > { %390 = vst [vmem:[%s372_s5] sm:$0xf] %v389_v2 }
 0x18e   : > { %669 = shalt.err (!%p666_p4)
}
 0x18f   : > { %592 = dma.vmem_to_hbm [thread:$0]  (%p773_p5), %s416_s26, 32, %s418_s29, %s363_s6  }
 0x190   : > { %s426_s19 = scalar_lea.vmem (%p773_p5), %s914_s3, %s852_s10 }
 0x1d2   : > { %v323_v6 = vpop.trf.xlu0 }
 0x1d3   : > { %339 = vst [vmem:[%s811_s22] sm:$0x1] %v323_v6 }
 0x1d7   : > { %423 = sbr.rel (!%p773_p5) target bundleno = 484 (0x1e4), region = 96 }
 0x1da   : > { %v354_v7 = vld [vmem:[#allocation7] sm:$0x3] }
 0x1db   : > { %357 = vst [vmem:[%s154_s21] sm:$0x3] %v354_v7 }
 0x1e2   : > { %v443_v8 = vld [vmem:[%s154_s21] sm:$0x3] }
 0x1e3   : > { %444 = vst [vmem:[%s426_s19] sm:$0x3] %v443_v8 }
 0x1e4 PF: > { %s472_s20 = sand.u32 1, %s696_s12   ;;  %p595_p8 = pnand %p573_p7, %p777_p6 }
 0x1e5   : > { %s473_s24 = scalar_lea.sflag [#allocation6], %s472_s20 }
 0x1e6   : > { %p596_p9 = pneg %p595_p8 }
 0x1e8   : > { %691 = dma.done.wait (%p596_p9), %s473_s24, 32  }
 0x1e9   : > { %693 = vsyncadd (%p596_p9), %s473_s24, 4294967264  ;;  %p10_p5 = scmp.ge.s32.totalorder %s760_s18, 4   ;;  %s917_s12 = smov %s700_s13 }
 0x1ea   : > { %s918_s13 = smov %s704_s14  ;;  %s919_s14 = smov %s771_s23 }
 0x1eb   : > { %s920_s15 = smov %s760_s18  ;;  %12 = sbr.rel (!%p10_p5) target bundleno = 3 (0x3), region = 213 }
 0x1f0   :  { %486 = vsyncpa [#allocation6], 1 }
 0x1f1   :  { %488 = vsyncpa [#allocation6 + $0x1], 1 }

// kernel: custom-call.13
= control target key start
LH: loop header
LB: loop body
LE: loop exit
PB: predicated region body
PF: predicated region fallthrough
CT: control target
= control target key end

     0   :  { %s373_s6 = smov 0   ;;  %s375_s7 = smov 0   ;;  %s422_s0 = inlined_call_operand.vmem [shape: f32[2,1,3,3], index: 0, kind: input, shape index: {}]   ;;  %s423_s1 = inlined_call_operand.vmem [shape: f32[2,1,3,3], index: 1, kind: output, shape index: {}]  }
   0x1   :  { %s377_s8 = smov 0  }
   0x2 LB: > { %s299_s9 = sadd.s32 4294967295, %s360_s8   ;;  %s33_s10 = sadd.s32 1, %s356_s7  ;;  %s360_s8 = sphi %s377_s8, %s7_s8   ;;  %s356_s7 = sphi %s375_s7, %s425_s7   ;;  %s352_s6 = sphi %s373_s6, %s424_s6  }
   0x3   : > { %p35_p0 = scmp.ge.s32.totalorder %s33_s10, 2  ;;  %p301_p1 = scmp.ge.s32.totalorder %s360_s8, 2 }
   0x4   : > { %s49_s11 = sand.u32 (!%p301_p1), 1, %s360_s8   ;;  %s303_s12 = sshll.u32 (!%p301_p1), %s356_s7, 2 }
   0x5   : > { %s427_s10 = smov (%p35_p0, %s33_s10), 0  ;;  %47 = sbr.rel (%p301_p1) target bundleno = 12 (0xc), region = 16 }
   0x6   : > { %s302_s13 = sshll.u32 (!%p301_p1), %s49_s11, 2  ;;  %s56_s16 = scalar_lea.vmem (!%p301_p1), %s422_s0, %s303_s12 }
   0x7   : > { %s51_s17 = scalar_lea.vmem (!%p301_p1), [#allocation1], %s302_s13 }
   0xa   : > { %v73_v0 = vld [vmem:[%s56_s16] sm:$0xf] }
   0xb   : > { %74 = vst [vmem:[%s51_s17] sm:$0xf] %v73_v0 }
   0xc PF: > { %p304_p2 = scmp.ge.s32.totalorder %s360_s8, 1  ;;  %p91_p3 = scmp.lt.s32.totalorder %s360_s8, 3 }
   0xe   : > { %p92_p4 = pnand %p304_p2, %p91_p3 }
  0x10   : > { %95 = sbr.rel (%p92_p4) target bundleno = 437 (0x1b5), region = 50 }
  0x15   : > { %s400_s18 = sand.u32 1, %s299_s9   ;;  %v113_v1 = vlaneseq  ;;  %v362_v20 = vmov -1.0   ;;  %s308_s22 = sshll.u32 %s352_s6, 2 }
  0x16   : > { %s305_s19 = sshll.u32 %s400_s18, 2  ;;  %s206_s25 = scalar_lea.vmem %s423_s1, %s308_s22 }
  0x17   : > { %s104_s20 = scalar_lea.vmem [#allocation1], %s305_s19  ;;  %v114_v3 = vand.u32 127, %v113_v1  ;;  %v117_v4 = vshrl.u32 %v113_v1, 7  ;;  %s108_s21 = scalar_lea.vmem [#allocation3], %s305_s19 }
  0x18   : > { %v111_v2 = vld [vmem:[%s104_s20] sm:$0xf] }
  0x19   : > { %112 = vst [vmem:[#allocation0] sm:$0xf] %v111_v2  ;;  %vm119_vm0 = vcmp.eq.s32.totalorder %v117_v4, %v114_v3  ;;  %vm115_vm1 = vcmp.lt.s32.totalorder %v114_v3, 3  ;;  %vm124_vm2 = vcmp.ge.s32.totalorder %v117_v4, %v114_v3  ;;  %vm151_vm8 = vcmp.eq.s32.totalorder %v114_v3, 0 }
  0x1a   : > { %vm125_vm3 = vmand %vm124_vm2, %vm115_vm1  ;;  %vm148_vm9 = vcmp.eq.s32.totalorder %v114_v3, %v117_v4  ;;  %v152_v21 = vsel %vm151_vm8, 1.0, %v362_v20  ;;  %vm159_vm10 = vcmp.eq.s32.totalorder %v114_v3, 1  ;;  %vm169_vm11 = vcmp.eq.s32.totalorder %v114_v3, 2 }
  0x1b   : > { %v153_v22 = vsel %vm148_vm9, %v152_v21, 0.0 }
  0x20   : > { %v120_v5 = vld [vmem:[#allocation0] sm:$0xff] }
  0x21   : > { %v121_v6 = vsel %vm119_vm0, %v120_v5, 0.0  ;;  %v126_v15 = vsel %vm125_vm3, %v120_v5, 0.0 }
  0x22   : > { %122 = vadd.xlane.f32.xlu0 %v121_v6 }
  0x95   : > { %v123_v7 = vpop.xlane.xlu0 %122 }
  0x96   : > { %336 = vrcp.f32 %v123_v7  ;;  %v138_v11 = vand.u32 2147483648, %v123_v7  ;;  %v136_v13 = vand.u32 2147483647, %v123_v7  ;;  %vm132_vm5 = vweird.f32 %v123_v7 }
  0x98   : > { %v139_v16 = vor.u32 1.1754944e-38, %v138_v11  ;;  %vm137_vm7 = vcmp.eq.f32.partialorder %v136_v13, 8.507059e+37 }
  0x9c   : > { %v337_v8 = vpop.eup %336 }
  0x9d   : > { %v128_v9 = vmul.f32 %v337_v8, %v123_v7  ;;  %vm133_vm4 = vweird.f32 %v337_v8 }
  0x9e   : > { %vm134_vm6 = vmor %vm132_vm5, %vm133_vm4 }
  0x9f   : > { %v129_v10 = vsub.f32 1.0, %v128_v9 }
  0xa1   : > { %v130_v12 = vmul.f32 %v337_v8, %v129_v10 }
  0xa3   : > { %v131_v14 = vadd.f32 %v337_v8, %v130_v12 }
  0xa5   : > { %v135_v17 = vsel %vm134_vm6, %v337_v8, %v131_v14 }
  0xa6   : > { %v140_v18 = vsel %vm137_vm7, %v139_v16, %v135_v17 }
  0xa7   : > { %v141_v19 = vmul.f32 %v140_v18, %v126_v15 }
  0xa9   : > { %142 = vst [vmem:[#allocation4] sm:$0xff] %v141_v19 }
  0xb0   : > { %v155_v23 = vld [vmem:[#allocation4 + $0x1] ss:$0 sm:$0xff]  ;;  %v165_v26 = vld [vmem:[#allocation4 + $0x2] ss:$0 sm:$0xff] }
  0xb1   : > { %v156_v24 = vxor.u32 2147483648, %v155_v23  ;;  %v166_v28 = vxor.u32 2147483648, %v165_v26 }
  0xb3   : > { %v160_v25 = vmul.f32 %v156_v24, %v153_v22 }
  0xb5   : > { %161 = vadd.xlane.f32.xlu0 %v160_v25 }
 0x128   : > { %v162_v27 = vpop.xlane.xlu0 %161 }
 0x129   : > { %v163_v29 = vsel %vm159_vm10, %v162_v27, %v153_v22 }
 0x12a   : > { %v170_v30 = vmul.f32 %v166_v28, %v163_v29 }
 0x12c   : > { %171 = vadd.xlane.f32.xlu1 %v170_v30 }
 0x19f   : > { %v172_v31 = vpop.xlane.xlu1 %171 }
 0x1a0   : > { %v173_v32 = vsel %vm169_vm11, %v172_v31, %v163_v29 }
 0x1a1   : > { %v188_v33 = vmul.f32 %v173_v32, %v140_v18 }
 0x1a3   : > { %v190_v34 = vsel %vm132_vm5, %v173_v32, %v188_v33 }
 0x1a4   : > { %191 = vst [vmem:[#allocation2] sm:$0xff] %v190_v34 }
 0x1ab   : > { %v194_v35 = vld [vmem:[#allocation2] sm:$0xf] }
 0x1ac   : > { %197 = vst [vmem:[%s108_s21] sm:$0xf] %v194_v35 }
 0x1b3   : > { %v223_v36 = vld [vmem:[%s108_s21] sm:$0xf] }
 0x1b4   : > { %224 = vst [vmem:[%s206_s25] sm:$0xf] %v223_v36 }
 0x1b5 PF: > { %s7_s8 = sadd.s32 1, %s360_s8   ;;  %s424_s6 = smov %s356_s7 }
 0x1b6   : > { %p4_p5 = scmp.ge.s32.totalorder %s7_s8, 4   ;;  %s425_s7 = smov %s427_s10 }
 0x1b8   :  { %6 = sbr.rel (!%p4_p5) target bundleno = 2 (0x2), region = 112 }

// kernel: custom-call.12
= control target key start
LH: loop header
LB: loop body
LE: loop exit
PB: predicated region body
PF: predicated region fallthrough
CT: control target
= control target key end

     0   :  { %s372_s6 = smov 0   ;;  %s374_s7 = smov 0   ;;  %s421_s0 = inlined_call_operand.vmem [shape: f32[2,1,3,3], index: 0, kind: input, shape index: {}]   ;;  %s422_s1 = inlined_call_operand.vmem [shape: f32[2,1,3,3], index: 1, kind: output, shape index: {}]  }
   0x1   :  { %s376_s8 = smov 0  }
   0x2 LB: > { %s298_s9 = sadd.s32 4294967295, %s359_s8   ;;  %s33_s10 = sadd.s32 1, %s355_s7  ;;  %s359_s8 = sphi %s376_s8, %s7_s8   ;;  %s355_s7 = sphi %s374_s7, %s424_s7   ;;  %s351_s6 = sphi %s372_s6, %s423_s6  }
   0x3   : > { %p35_p0 = scmp.ge.s32.totalorder %s33_s10, 2  ;;  %p300_p1 = scmp.ge.s32.totalorder %s359_s8, 2 }
   0x4   : > { %s49_s11 = sand.u32 (!%p300_p1), 1, %s359_s8   ;;  %s302_s12 = sshll.u32 (!%p300_p1), %s355_s7, 2 }
   0x5   : > { %s426_s10 = smov (%p35_p0, %s33_s10), 0  ;;  %47 = sbr.rel (%p300_p1) target bundleno = 12 (0xc), region = 16 }
   0x6   : > { %s301_s13 = sshll.u32 (!%p300_p1), %s49_s11, 2  ;;  %s56_s16 = scalar_lea.vmem (!%p300_p1), %s421_s0, %s302_s12 }
   0x7   : > { %s51_s17 = scalar_lea.vmem (!%p300_p1), [#allocation1], %s301_s13 }
   0xa   : > { %v73_v0 = vld [vmem:[%s56_s16] sm:$0xf] }
   0xb   : > { %74 = vst [vmem:[%s51_s17] sm:$0xf] %v73_v0 }
   0xc PF: > { %p303_p2 = scmp.ge.s32.totalorder %s359_s8, 1  ;;  %p91_p3 = scmp.lt.s32.totalorder %s359_s8, 3 }
   0xe   : > { %p92_p4 = pnand %p303_p2, %p91_p3 }
  0x10   : > { %95 = sbr.rel (%p92_p4) target bundleno = 437 (0x1b5), region = 50 }
  0x15   : > { %s399_s18 = sand.u32 1, %s298_s9   ;;  %v113_v1 = vlaneseq  ;;  %v361_v20 = vmov -1.0   ;;  %s307_s22 = sshll.u32 %s351_s6, 2 }
  0x16   : > { %s304_s19 = sshll.u32 %s399_s18, 2  ;;  %s205_s25 = scalar_lea.vmem %s422_s1, %s307_s22 }
  0x17   : > { %s104_s20 = scalar_lea.vmem [#allocation1], %s304_s19  ;;  %v114_v3 = vand.u32 127, %v113_v1  ;;  %v117_v4 = vshrl.u32 %v113_v1, 7  ;;  %s108_s21 = scalar_lea.vmem [#allocation3], %s304_s19 }
  0x18   : > { %v111_v2 = vld [vmem:[%s104_s20] sm:$0xf] }
  0x19   : > { %112 = vst [vmem:[#allocation0] sm:$0xf] %v111_v2  ;;  %vm119_vm0 = vcmp.eq.s32.totalorder %v117_v4, %v114_v3  ;;  %vm115_vm1 = vcmp.lt.s32.totalorder %v114_v3, 3  ;;  %vm124_vm2 = vcmp.le.s32.totalorder %v117_v4, %v114_v3  ;;  %vm151_vm8 = vcmp.eq.s32.totalorder %v114_v3, 2 }
  0x1a   : > { %vm125_vm3 = vmand %vm124_vm2, %vm115_vm1  ;;  %vm148_vm9 = vcmp.eq.s32.totalorder %v114_v3, %v117_v4  ;;  %v152_v21 = vsel %vm151_vm8, 1.0, %v361_v20  ;;  %vm159_vm10 = vcmp.eq.s32.totalorder %v114_v3, 1  ;;  %vm168_vm11 = vcmp.eq.s32.totalorder %v114_v3, 0 }
  0x1b   : > { %v153_v22 = vsel %vm148_vm9, %v152_v21, 0.0 }
  0x20   : > { %v120_v5 = vld [vmem:[#allocation0] sm:$0xff] }
  0x21   : > { %v121_v6 = vsel %vm119_vm0, %v120_v5, 0.0  ;;  %v126_v15 = vsel %vm125_vm3, %v120_v5, 0.0 }
  0x22   : > { %122 = vadd.xlane.f32.xlu0 %v121_v6 }
  0x95   : > { %v123_v7 = vpop.xlane.xlu0 %122 }
  0x96   : > { %335 = vrcp.f32 %v123_v7  ;;  %v138_v11 = vand.u32 2147483648, %v123_v7  ;;  %v136_v13 = vand.u32 2147483647, %v123_v7  ;;  %vm132_vm5 = vweird.f32 %v123_v7 }
  0x98   : > { %v139_v16 = vor.u32 1.1754944e-38, %v138_v11  ;;  %vm137_vm7 = vcmp.eq.f32.partialorder %v136_v13, 8.507059e+37 }
  0x9c   : > { %v336_v8 = vpop.eup %335 }
  0x9d   : > { %v128_v9 = vmul.f32 %v336_v8, %v123_v7  ;;  %vm133_vm4 = vweird.f32 %v336_v8 }
  0x9e   : > { %vm134_vm6 = vmor %vm132_vm5, %vm133_vm4 }
  0x9f   : > { %v129_v10 = vsub.f32 1.0, %v128_v9 }
  0xa1   : > { %v130_v12 = vmul.f32 %v336_v8, %v129_v10 }
  0xa3   : > { %v131_v14 = vadd.f32 %v336_v8, %v130_v12 }
  0xa5   : > { %v135_v17 = vsel %vm134_vm6, %v336_v8, %v131_v14 }
  0xa6   : > { %v140_v18 = vsel %vm137_vm7, %v139_v16, %v135_v17 }
  0xa7   : > { %v141_v19 = vmul.f32 %v140_v18, %v126_v15 }
  0xa9   : > { %142 = vst [vmem:[#allocation4] sm:$0xff] %v141_v19 }
  0xb0   : > { %v155_v23 = vld [vmem:[#allocation4 + $0x1] ss:$0 sm:$0xff]  ;;  %v164_v26 = vld [vmem:[#allocation4] ss:$0 sm:$0xff] }
  0xb1   : > { %v156_v24 = vxor.u32 2147483648, %v155_v23  ;;  %v165_v28 = vxor.u32 2147483648, %v164_v26 }
  0xb3   : > { %v160_v25 = vmul.f32 %v156_v24, %v153_v22 }
  0xb5   : > { %161 = vadd.xlane.f32.xlu0 %v160_v25 }
 0x128   : > { %v162_v27 = vpop.xlane.xlu0 %161 }
 0x129   : > { %v163_v29 = vsel %vm159_vm10, %v162_v27, %v153_v22 }
 0x12a   : > { %v169_v30 = vmul.f32 %v165_v28, %v163_v29 }
 0x12c   : > { %170 = vadd.xlane.f32.xlu1 %v169_v30 }
 0x19f   : > { %v171_v31 = vpop.xlane.xlu1 %170 }
 0x1a0   : > { %v172_v32 = vsel %vm168_vm11, %v171_v31, %v163_v29 }
 0x1a1   : > { %v187_v33 = vmul.f32 %v172_v32, %v140_v18 }
 0x1a3   : > { %v189_v34 = vsel %vm132_vm5, %v172_v32, %v187_v33 }
 0x1a4   : > { %190 = vst [vmem:[#allocation2] sm:$0xff] %v189_v34 }
 0x1ab   : > { %v193_v35 = vld [vmem:[#allocation2] sm:$0xf] }
 0x1ac   : > { %196 = vst [vmem:[%s108_s21] sm:$0xf] %v193_v35 }
 0x1b3   : > { %v222_v36 = vld [vmem:[%s108_s21] sm:$0xf] }
 0x1b4   : > { %223 = vst [vmem:[%s205_s25] sm:$0xf] %v222_v36 }
 0x1b5 PF: > { %s7_s8 = sadd.s32 1, %s359_s8   ;;  %s423_s6 = smov %s355_s7 }
 0x1b6   : > { %p4_p5 = scmp.ge.s32.totalorder %s7_s8, 4   ;;  %s424_s7 = smov %s426_s10 }
 0x1b8   :  { %6 = sbr.rel (!%p4_p5) target bundleno = 2 (0x2), region = 111 }

// kernel: surface_loss_forward.1
= control target key start
LH: loop header
LB: loop body
LE: loop exit
PB: predicated region body
PF: predicated region fallthrough
CT: control target
= control target key end

     0   :  { %8 = vsyncpa [#allocation4], 0  ;;  %s2312_s0 = inlined_call_operand.vmem [shape: f32[2,13], index: 0, kind: input, shape index: {}]   ;;  %s2313_s1 = inlined_call_operand.vmem [shape: f32[2,3,1024], index: 1, kind: input, shape index: {}]   ;;  %s2314_s2 = inlined_call_operand.vmem [shape: f32[2,64,3], index: 2, kind: input, shape index: {}]   ;;  %s2315_s3 = inlined_call_operand.hbm [shape: f32[1], index: 3, kind: output, shape index: {}]  }
   0x1   :  { %9 = vsyncpa [#allocation3], 0  ;;  %s15_s14 = sshll.u32 %s2312_s0, 4  ;;  %s1327_s15 = smov [#allocation2]   ;;  %s16_s14 = int_to_ptr.vmem [resolvable:$true] %s15_s14 }
   0x2   :  { %18 = dma.vmem_to_smem %s16_s14, 32, %s1327_s15, [#allocation4]  }
   0x3   :  { %1315 = dma.done.wait [#allocation4], 32  }
   0x4   :  { %1316 = vsyncadd [#allocation4], 4294967264 }
   0x5   :  { %27 = sfence }
   0x6   :  { %s1355_s16 = smov 0.0   ;;  %s1357_s17 = smov 0  }
   0x7 LB: > { %v1328_v0 = vmov 1   ;;  %v1329_v1 = vmov 0   ;;  %s1223_s0 = sshll.u32 %s1325_s17, 6  ;;  %v1330_v6 = vmov 2   ;;  %s1383_s21 = sshll.u32 %s1325_s17, 7  ;;  %vm1056_vm0 = vcmask 1040384   ;;  %s1325_s17 = sphi %s1357_s17, %s50_s17   ;;  %s1321_s16 = sphi %s1355_s16, %s2617_s16  }
   0x8   : > { %1268 = vset.pattern.permute.xlu1 %v1328_v0  ;;  %1269 = vset.pattern.permute.xlu2 %v1329_v1  ;;  %s1371_s20 = scalar_lea.vmem %s2314_s2, %s1223_s0  ;;  %s1241_s22 = sshll.u32 %s1325_s17, 5  ;;  %vm1162_vm1 = vcmask 7168  }
   0x9   : > { %1267 = vset.pattern.permute.xlu0 %v1329_v1  ;;  %v63_v2 = vld [vmem:[%s1371_s20 + $0x10] sm:$0xff]  ;;  %v61_v3 = vld [vmem:[%s1371_s20] sm:$0xff]  ;;  %v62_v4 = vld [vmem:[%s1371_s20 + $0x8] sm:$0xff]  ;;  %s85_s23 = sadd.s32 8, %s1383_s21  ;;  %s54_s26 = scalar_lea.vmem %s2313_s1, %s1241_s22 }
   0xa   : > { %264 = vperm.xlu2 %1269, %v63_v2   ;;  %385 = vperm.xlu1 %1268, %v61_v3   ;;  %v65_v5 = vld [vmem:[%s1371_s20 + $0x20] sm:$0xff]  ;;  %v64_v7 = vld [vmem:[%s1371_s20 + $0x18] sm:$0xff]  ;;  %s75_s27 = sadd.s32 3, %s1383_s21  ;;  %s83_s28 = sadd.s32 7, %s1383_s21  ;;  %v1393_v8 = vld [vmem:[%s1371_s20 + $0x28] sm:$0xff] }
   0xb   : > { %254 = vperm.xlu0 %1267, %v61_v3   ;;  %s86_s29 = sld [smem:[#allocation2 + %s85_s23]]  ;;  %v55_v9 = vld [vmem:[%s54_s26] sm:$0x77]  ;;  %v1396_v10 = vld [vmem:[%s1371_s20 + $0x38] sm:$0xff]  ;;  %s91_s4 = sadd.s32 11, %s1383_s21  ;;  %v1407_v19 = vld [vmem:[%s1371_s20 + $0x30] sm:$0xff] }
   0xc   : > { %s76_s30 = sld [smem:[#allocation2 + %s75_s27]]  ;;  %s73_s5 = sadd.s32 2, %s1383_s21  ;;  %v56_v11 = vld [vmem:[%s54_s26 + $0x8] sm:$0x77]  ;;  %v57_v12 = vld [vmem:[%s54_s26 + $0x10] sm:$0x77] }
   0xd   : > { %s84_s6 = sld [smem:[#allocation2 + %s83_s28]]  ;;  %s87_s7 = sadd.s32 9, %s1383_s21  ;;  %v58_v13 = vld [vmem:[%s54_s26 + $0x18] sm:$0x77]  ;;  %v95_v14 = vadd.f32 1.0, %v55_v9  ;;  %v96_v15 = vadd.f32 1.0, %v56_v11 }
   0xe   : > { %s92_s8 = sld [smem:[#allocation2 + %s91_s4]]  ;;  %s89_s10 = sadd.s32 10, %s1383_s21  ;;  %v97_v16 = vadd.f32 1.0, %v57_v12  ;;  %v98_v17 = vadd.f32 1.0, %v58_v13 }
   0xf   : > { %s74_s9 = sld [smem:[#allocation2 + %s73_s5]]  ;;  %v99_v18 = vmul.f32 64.0, %v95_v14  ;;  %v100_v21 = vmul.f32 64.0, %v96_v15  ;;  %s93_s13 = sadd.s32 12, %s1383_s21 }
  0x10   : > { %s88_s11 = sld [smem:[#allocation2 + %s87_s7]]  ;;  %v101_v22 = vmul.f32 64.0, %v97_v16  ;;  %v102_v23 = vmul.f32 64.0, %v98_v17  ;;  %s71_s0 = sadd.s32 1, %s1383_s21 }
  0x11   : > { %s90_s12 = sld [smem:[#allocation2 + %s89_s10]]  ;;  %v118_v20 = vstv %s86_s29  ;;  %s77_s18 = sadd.s32 4, %s1383_s21 }
  0x12   : > { %1270 = vset.pattern.permute.xlu2 %v1328_v0  ;;  %389 = vperm.xlu1 %1268, %v62_v4   ;;  %v103_v24 = vstv %s76_s30  ;;  %v119_v25 = vmul.f32 %v118_v20, %v99_v18  ;;  %v120_v29 = vmul.f32 %v118_v20, %v100_v21  ;;  %v121_v32 = vmul.f32 %v118_v20, %v101_v22  ;;  %s1415_s14 = sld [smem:[#allocation2 + %s93_s13]]  ;;  %s79_s22 = sadd.s32 5, %s1383_s21 }
  0x13   : > { %259 = vperm.xlu0 %1267, %v62_v4   ;;  %393 = vperm.xlu2 %1270, %v63_v2   ;;  %v113_v26 = vstv %s84_s6  ;;  %v104_v31 = vmul.f32 %v103_v24, %v55_v9  ;;  %v122_v33 = vmul.f32 %v118_v20, %v102_v23  ;;  %v105_v34 = vmul.f32 %v103_v24, %v56_v11  ;;  %s70_s15 = sld [smem:[#allocation2 + %s1383_s21]]  ;;  %s81_s23 = sadd.s32 6, %s1383_s21 }
  0x14   : > { %v153_v27 = vstv %s92_s8  ;;  %v114_v35 = vmul.f32 %v113_v26, %v99_v18  ;;  %v1225_v36 = vrot.slane %v119_v25, 9  ;;  %v106_v39 = vmul.f32 %v103_v24, %v57_v12  ;;  %s72_s19 = sld [smem:[#allocation2 + %s71_s0]]  ;;  %s50_s17 = sadd.s32 1, %s1325_s17  }
  0x15   : > { %v1413_v28 = vstv %s74_s9  ;;  %v154_v37 = vmul.f32 %v153_v27, %v99_v18  ;;  %v155_v40 = vmul.f32 %v153_v27, %v100_v21  ;;  %v156_v41 = vmul.f32 %v153_v27, %v101_v22  ;;  %s78_s20 = sld [smem:[#allocation2 + %s77_s18]]  ;;  %p47_p0 = scmp.ge.s32.totalorder %s50_s17, 2  }
  0x16   : > { %v143_v30 = vstv %s88_s11  ;;  %v107_v42 = vmul.f32 %v103_v24, %v58_v13  ;;  %v115_v43 = vmul.f32 %v113_v26, %v100_v21  ;;  %v1226_v44 = vrot.slane %v120_v29, 9  ;;  %s80_s24 = sld [smem:[#allocation2 + %s79_s22]]  ;;  %s1198_s7 = sshll.u32 (%p47_p0), %s2315_s3, 4  ;;  %s1199_s7 = int_to_ptr.hbm [resolvable:$true] %s1198_s7 }
  0x17   : > { %v148_v38 = vstv %s90_s12  ;;  %v157_v45 = vmul.f32 %v153_v27, %v102_v23  ;;  %v116_v46 = vmul.f32 %v113_v26, %v101_v22  ;;  %v117_v47 = vmul.f32 %v113_v26, %v102_v23  ;;  %s82_s25 = sld [smem:[#allocation2 + %s81_s23]]  ;;  %s1331_s8 = smov (%p47_p0), [#allocation5]  }
  0x18   : > { %v1227_v48 = vrot.slane %v121_v32, 9  ;;  %v1228_v49 = vrot.slane %v122_v33, 9  ;;  %v1420_v50 = vadd.f32 %v1413_v28, %v104_v31  ;;  %v139_v51 = vadd.f32 %v1225_v36, %v114_v35 }
  0x19   : > { %v149_v52 = vmul.f32 %v148_v38, %v99_v18  ;;  %v1229_v53 = vrot.slane %v154_v37, 9  ;;  %v150_v54 = vmul.f32 %v148_v38, %v100_v21  ;;  %v151_v55 = vmul.f32 %v148_v38, %v101_v22 }
  0x1a   : > { %1271 = vset.pattern.permute.xlu1 %v1330_v6  ;;  %v1230_v56 = vrot.slane %v155_v40, 9  ;;  %v1231_v57 = vrot.slane %v156_v41, 9  ;;  %v1425_v58 = vadd.f32 %v1413_v28, %v105_v34  ;;  %v140_v59 = vadd.f32 %v1226_v44, %v115_v43 }
  0x1b   : > { %274 = vperm.xlu0 %1267, %v65_v5   ;;  %1272 = vset.pattern.permute.xlu2 %v1329_v1  ;;  %v152_v60 = vmul.f32 %v148_v38, %v102_v23  ;;  %v1232_v61 = vrot.slane %v157_v45, 9  ;;  %v1428_v62 = vadd.f32 %v1413_v28, %v106_v39  ;;  %v1431_v63 = vadd.f32 %v1413_v28, %v107_v42 }
  0x1c   : > { %513 = vperm.xlu1 %1271, %v62_v4   ;;  %269 = vperm.xlu2 %1272, %v64_v7   ;;  %v191_v4 = vrot.slane %v1420_v50, 6  ;;  %v145_v9 = vadd.f32 %v143_v30, %v140_v59  ;;  %v193_v12 = vrot.slane %v1425_v58, 6  ;;  %v211_v38 = vstv %s70_s15 }
  0x1d   : > { %v177_v11 = vadd.f32 %v1232_v61, %v152_v60  ;;  %v195_v15 = vrot.slane %v1428_v62, 6  ;;  %v197_v16 = vrot.slane %v1431_v63, 6  ;;  %v238_v59 = vstv %s80_s24 }
  0x1e   : > { %v192_v20 = vrot.slane %v191_v4, 4  ;;  %v1234_v24 = vadd.f32 -320.0, %v145_v9  ;;  %v194_v25 = vrot.slane %v193_v12, 4  ;;  %v244_v4 = vsub.f32 %v1425_v58, %v1413_v28 }
  0x1f   : > { %v196_v29 = vrot.slane %v195_v15, 4  ;;  %v245_v9 = vsub.f32 %v1428_v62, %v1413_v28 }
  0x20   : > { %v204_v33 = vmul.f32 %v1234_v24, %v194_v25 }
  0x22   : > { %v208_v41 = vmul.f32 0.0017005935, %v204_v33 }
  0x23   : > { %1275 = vset.pattern.permute.xlu0 %v1330_v6 }
  0x24   : > { %1273 = vset.pattern.permute.xlu1 %v1328_v0  ;;  %509 = vperm.xlu0 %1275, %v61_v3   ;;  %v174_v3 = vadd.f32 %v1229_v53, %v149_v52  ;;  %v213_v52 = vsub.f32 %v208_v41, %v211_v38 }
  0x25   : > { %1274 = vset.pattern.permute.xlu2 %v1330_v6  ;;  %397 = vperm.xlu1 %1273, %v64_v7  }
  0x26   : > { %517 = vperm.xlu2 %1274, %v63_v2   ;;  %v144_v2 = vadd.f32 %v143_v30, %v139_v51 }
  0x28   : > { %v1233_v18 = vadd.f32 -320.0, %v144_v2 }
  0x2c   : > { %525 = vperm.xlu0 %1275, %v65_v5  }
  0x2d   : > { %401 = vperm.xlu1 %1273, %v65_v5   ;;  %v178_v5 = vstv %s1415_s14 }
  0x2e   : > { %521 = vperm.xlu2 %1274, %v64_v7   ;;  %v175_v7 = vadd.f32 %v1230_v56, %v150_v54  ;;  %v179_v17 = vadd.f32 %v178_v5, %v174_v3  ;;  %v182_v23 = vadd.f32 %v178_v5, %v177_v11  ;;  %v246_v11 = vsub.f32 %v1431_v63, %v1413_v28 }
  0x30   : > { %v180_v21 = vadd.f32 %v178_v5, %v175_v7  ;;  %v1237_v31 = vadd.f32 -240.0, %v179_v17  ;;  %v1240_v34 = vadd.f32 -240.0, %v182_v23 }
  0x32   : > { %v225_v37 = vmul.f32 %v1237_v31, %v192_v20 }
  0x34   : > { %1280 = vset.pattern.permute.xlu0 %v1328_v0 }
  0x35   : > { %1276 = vset.pattern.permute.xlu1 %v1329_v1  ;;  %413 = vperm.xlu0 %1280, %v1396_v10  }
  0x36   : > { %1277 = vset.pattern.permute.xlu2 %v1328_v0  ;;  %279 = vperm.xlu1 %1276, %v1393_v8   ;;  %v141_v0 = vadd.f32 %v1227_v48, %v116_v46  ;;  %v229_v46 = vmul.f32 0.0017033744, %v225_v37  ;;  %v233_v48 = vstv %s72_s19 }
  0x37   : > { %405 = vperm.xlu2 %1277, %v1393_v8  }
  0x38   : > { %v146_v13 = vadd.f32 %v143_v30, %v141_v0  ;;  %v243_v0 = vsub.f32 %v1420_v50, %v1413_v28 }
  0x3a   : > { %v1235_v26 = vadd.f32 -320.0, %v146_v13 }
  0x3d   : > { %1282 = vset.pattern.permute.xlu0 %v1330_v6 }
  0x3e   : > { %284 = vperm.xlu1 %1276, %v1407_v19  }
  0x3f   : > { %409 = vperm.xlu2 %1277, %v1407_v19  }
  0x46   : > { %1278 = vset.pattern.permute.xlu1 %v1330_v6 }
  0x47   : > { %1279 = vset.pattern.permute.xlu2 %v1329_v1  ;;  %529 = vperm.xlu1 %1278, %v1393_v8   ;;  %v142_v1 = vadd.f32 %v1228_v49, %v117_v47  ;;  %v176_v8 = vadd.f32 %v1231_v57, %v151_v55  ;;  %v216_v47 = vstv %s78_s20  ;;  %v234_v57 = vsub.f32 %v229_v46, %v233_v48 }
  0x48   : > { %289 = vperm.xlu2 %1279, %v1396_v10   ;;  %v218_v2 = vmul.f32 %v216_v47, %v213_v52 }
  0x49   : > { %v147_v14 = vadd.f32 %v143_v30, %v142_v1  ;;  %v181_v22 = vadd.f32 %v178_v5, %v176_v8  ;;  %v198_v30 = vrot.slane %v197_v16, 4  ;;  %v247_v1 = vstv %s82_s25 }
  0x4a   : > { %v239_v8 = vmul.f32 %v238_v59, %v234_v57  ;;  %v1454_v50 = vmul.f32 %v247_v1, %v243_v0  ;;  %v1456_v17 = vmul.f32 %v247_v1, %v244_v4  ;;  %v298_v58 = vperm.slane %v218_v2, 0 }
  0x4b   : > { %v1236_v27 = vadd.f32 -320.0, %v147_v14  ;;  %v1239_v32 = vadd.f32 -240.0, %v181_v22  ;;  %v228_v42 = vmul.f32 %v1240_v34, %v198_v30  ;;  %v1458_v24 = vmul.f32 %v247_v1, %v245_v9 }
  0x4c   : > { %v1460_v62 = vmul.f32 %v247_v1, %v246_v11  ;;  %v420_v63 = vperm.slane %v239_v8, 0  ;;  %v545_v46 = vperm.slane %v1454_v50, 6 }
  0x4d   : > { %v206_v35 = vmul.f32 %v1236_v27, %v198_v30  ;;  %v227_v40 = vmul.f32 %v1239_v32, %v196_v29  ;;  %v232_v53 = vmul.f32 0.0017033744, %v228_v42 }
  0x4e   : > { %v550_v52 = vperm.slane %v1460_v62, 2 }
  0x4f   : > { %533 = vperm.xlu1 %1278, %v1407_v19   ;;  %v203_v19 = vmul.f32 %v1233_v18, %v192_v20  ;;  %v210_v44 = vmul.f32 0.0017005935, %v206_v35  ;;  %v231_v51 = vmul.f32 0.0017033744, %v227_v40  ;;  %v237_v3 = vsub.f32 %v232_v53, %v233_v48 }
  0x50   : > { %1281 = vset.pattern.permute.xlu2 %v1330_v6  ;;  %v1238_v6 = vadd.f32 -240.0, %v180_v21  ;;  %v299_v20 = vperm.slane %v218_v2, 4  ;;  %v1476_v35 = vperm.slane %v420_v63, 0  ;;  %v551_v53 = vperm.slane %v1460_v62, 6 }
  0x51   : > { %537 = vperm.xlu2 %1281, %v1396_v10   ;;  %v205_v10 = vmul.f32 %v1235_v26, %v196_v29  ;;  %v207_v36 = vmul.f32 0.0017005935, %v203_v19  ;;  %v215_v55 = vsub.f32 %v210_v44, %v211_v38  ;;  %v236_v61 = vsub.f32 %v231_v51, %v233_v48 }
  0x52   : > { %v226_v39 = vmul.f32 %v1238_v6, %v194_v25  ;;  %v242_v16 = vmul.f32 %v238_v59, %v237_v3  ;;  %v421_v25 = vperm.slane %v239_v8, 4  ;;  %v1466_v19 = vperm.slane %v298_v58, 0 }
  0x53   : > { %v209_v43 = vmul.f32 0.0017005935, %v205_v10  ;;  %v212_v45 = vsub.f32 %v207_v36, %v211_v38  ;;  %v220_v7 = vmul.f32 %v216_v47, %v215_v55  ;;  %v241_v15 = vmul.f32 %v238_v59, %v236_v61 }
  0x54   : > { %v230_v49 = vmul.f32 0.0017033744, %v226_v39  ;;  %2405 = vst [vmem:[#allocation9_spill] sm:$0xff] %v1466_v19  ;;  %v426_v6 = vperm.slane %v242_v16, 0  ;;  %v1468_v32 = vperm.slane %v299_v20, 0  ;;  %v544_v36 = vperm.slane %v1454_v50, 2 }
  0x55   : > { %v214_v54 = vsub.f32 %v209_v43, %v211_v38  ;;  %v217_v56 = vmul.f32 %v216_v47, %v212_v45  ;;  %v302_v23 = vperm.slane %v220_v7, 0  ;;  %v424_v29 = vperm.slane %v241_v15, 0 }
  0x56   : > { %v235_v60 = vsub.f32 %v230_v49, %v233_v48  ;;  %v425_v31 = vperm.slane %v241_v15, 4  ;;  %2406 = vst [vmem:[#allocation10_spill] sm:$0xff] %v1468_v32  ;;  %v303_v37 = vperm.slane %v220_v7, 4  ;;  %v427_v38 = vperm.slane %v242_v16, 4 }
  0x57   : > { %v219_v5 = vmul.f32 %v216_v47, %v214_v54  ;;  %v296_v12 = vperm.slane %v217_v56, 0  ;;  %v297_v18 = vperm.slane %v217_v56, 4  ;;  %v1474_v10 = vperm.slane %v302_v23, 0 }
  0x58   : > { %v240_v14 = vmul.f32 %v238_v59, %v235_v60  ;;  %v1479_v39 = vperm.slane %v421_v25, 0  ;;  %v1485_v42 = vperm.slane %v424_v29, 0  ;;  %v1487_v44 = vperm.slane %v425_v31, 0 }
  0x59   : > { %v300_v21 = vperm.slane %v219_v5, 0  ;;  %v301_v22 = vperm.slane %v219_v5, 4  ;;  %v1462_v28 = vperm.slane %v296_v12, 0  ;;  %v1464_v30 = vperm.slane %v297_v18, 0  ;;  %2409 = vst [vmem:[#allocation13_spill] sm:$0xff] %v1474_v10 }
  0x5a   : > { %v422_v26 = vperm.slane %v240_v14, 0  ;;  %v423_v27 = vperm.slane %v240_v14, 4  ;;  %2410 = vst [vmem:[#allocation14_spill] sm:$0xff] %v1479_v39  ;;  %v1489_v45 = vperm.slane %v426_v6, 0  ;;  %v546_v47 = vperm.slane %v1456_v17, 2 }
  0x5b   : > { %2404 = vst [vmem:[#allocation8_spill] sm:$0xff] %v1464_v30  ;;  %v1470_v33 = vperm.slane %v300_v21, 0  ;;  %v1472_v34 = vperm.slane %v301_v22, 0  ;;  %v547_v48 = vperm.slane %v1456_v17, 6  ;;  %v548_v49 = vperm.slane %v1458_v24, 2 }
  0x5c   : > { %v1481_v40 = vperm.slane %v422_v26, 0  ;;  %v1483_v41 = vperm.slane %v423_v27, 0  ;;  %2413 = vst [vmem:[#allocation17_spill] sm:$0xff] %v1485_v42  ;;  %v549_v51 = vperm.slane %v1458_v24, 6  ;;  %v1498_v54 = vperm.slane %v544_v36, 2 }
  0x5d   : > { %2407 = vst [vmem:[#allocation11_spill] sm:$0xff] %v1470_v33  ;;  %v1500_v55 = vperm.slane %v303_v37, 0  ;;  %v1502_v56 = vperm.slane %v427_v38, 0  ;;  %v1522_v29 = vperm.slane %v545_v46, 2  ;;  %v1524_v31 = vperm.slane %v546_v47, 2 }
  0x5e   : > { %2408 = vst [vmem:[#allocation12_spill] sm:$0xff] %v1472_v34  ;;  %v1526_v6 = vperm.slane %v547_v48, 2  ;;  %v1528_v36 = vperm.slane %v548_v49, 2  ;;  %v1530_v37 = vperm.slane %v549_v51, 2  ;;  %v1532_v38 = vperm.slane %v550_v52, 2 }
  0x5f   : > { %2411 = vst [vmem:[#allocation15_spill] sm:$0xff] %v1481_v40 }
  0x60   : > { %2412 = vst [vmem:[#allocation16_spill] sm:$0xff] %v1483_v41 }
  0x61   : > { %2414 = vst [vmem:[#allocation18_spill] sm:$0xff] %v1487_v44 }
  0x62   : > { %2415 = vst [vmem:[#allocation19_spill] sm:$0xff] %v1489_v45 }
  0x63   : > { %2416 = vst [vmem:[#allocation20_spill] sm:$0xff] %v1498_v54 }
  0x64   : > { %v265_v13 = vpop.permute.xlu2 %264  ;;  %2417 = vst [vmem:[#allocation21_spill] sm:$0xff] %v1500_v55 }
  0x65   : > { %2418 = vst [vmem:[#allocation22_spill] sm:$0xff] %v1502_v56  ;;  %v336_v57 = vsub.f32 %v265_v13, %v1462_v28  ;;  %v337_v59 = vsub.f32 %v265_v13, %v1464_v30  ;;  %v338_v60 = vsub.f32 %v265_v13, %v1466_v19  ;;  %v339_v61 = vsub.f32 %v265_v13, %v1468_v32 }
  0x66   : > { %v340_v1 = vsub.f32 %v265_v13, %v1470_v33  ;;  %v341_v2 = vsub.f32 %v265_v13, %v1472_v34  ;;  %v342_v3 = vsub.f32 %v265_v13, %v1474_v10  ;;  %v343_v9 = vsub.f32 %v265_v13, %v1500_v55  ;;  %2420 = vst [vmem:[#allocation24_spill] sm:$0xff] %v1522_v29 }
  0x67   : > { %v648_v15 = vmul.f32 %v336_v57, %v336_v57  ;;  %v649_v50 = vmul.f32 %v337_v59, %v337_v59  ;;  %v650_v16 = vmul.f32 %v338_v60, %v338_v60  ;;  %v651_v17 = vmul.f32 %v339_v61, %v339_v61  ;;  %2421 = vst [vmem:[#allocation25_spill] sm:$0xff] %v1524_v31 }
  0x68   : > { %v652_v18 = vmul.f32 %v340_v1, %v340_v1  ;;  %v653_v58 = vmul.f32 %v341_v2, %v341_v2  ;;  %v654_v20 = vmul.f32 %v342_v3, %v342_v3  ;;  %v655_v63 = vmul.f32 %v343_v9, %v343_v9  ;;  %2422 = vst [vmem:[#allocation26_spill] sm:$0xff] %v1526_v6 }
  0x69   : > { %2423 = vst [vmem:[#allocation27_spill] sm:$0xff] %v1528_v36 }
  0x6a   : > { %2424 = vst [vmem:[#allocation28_spill] sm:$0xff] %v1530_v37 }
  0x6b   : > { %2425 = vst [vmem:[#allocation29_spill] sm:$0xff] %v1532_v38 }
  0x6d   : > { %v394_v43 = vpop.permute.xlu2 %393 }
  0x6e   : > { %v460_v0 = vsub.f32 %v394_v43, %v1476_v35  ;;  %v461_v4 = vsub.f32 %v394_v43, %v1479_v39  ;;  %v462_v5 = vsub.f32 %v394_v43, %v1481_v40  ;;  %v463_v7 = vsub.f32 %v394_v43, %v1483_v41 }
  0x6f   : > { %v464_v8 = vsub.f32 %v394_v43, %v1485_v42  ;;  %v465_v11 = vsub.f32 %v394_v43, %v1487_v44  ;;  %v466_v12 = vsub.f32 %v394_v43, %v1489_v45  ;;  %v467_v14 = vsub.f32 %v394_v43, %v1502_v56 }
  0x70   : > { %v712_v21 = vmul.f32 %v460_v0, %v460_v0  ;;  %v713_v23 = vmul.f32 %v461_v4, %v461_v4  ;;  %v714_v24 = vmul.f32 %v462_v5, %v462_v5  ;;  %v715_v62 = vmul.f32 %v463_v7, %v463_v7 }
  0x71   : > { %v716_v13 = vmul.f32 %v464_v8, %v464_v8  ;;  %v717_v25 = vmul.f32 %v465_v11, %v465_v11  ;;  %v718_v26 = vmul.f32 %v466_v12, %v466_v12  ;;  %v719_v27 = vmul.f32 %v467_v14, %v467_v14 }
  0x72   : > { %v1534_v43 = vperm.slane %v551_v53, 2  ;;  %v776_v57 = vadd.f32 %v712_v21, %v648_v15  ;;  %v777_v59 = vadd.f32 %v713_v23, %v649_v50  ;;  %v778_v60 = vadd.f32 %v714_v24, %v650_v16 }
  0x73   : > { %v779_v61 = vadd.f32 %v715_v62, %v651_v17  ;;  %v780_v0 = vadd.f32 %v716_v13, %v652_v18  ;;  %v781_v48 = vadd.f32 %v717_v25, %v653_v58  ;;  %v782_v1 = vadd.f32 %v718_v26, %v654_v20 }
  0x74   : > { %2426 = vst [vmem:[#allocation30_spill] sm:$0xff] %v1534_v43  ;;  %v783_v49 = vadd.f32 %v719_v27, %v655_v63 }
  0x76   : > { %v1520_v22 = vpop.permute.xlu2 %269 }
  0x77   : > { %2419 = vst [vmem:[#allocation23_spill] sm:$0xff] %v1520_v22  ;;  %v1538_v46 = vsub.f32 %v1520_v22, %v1462_v28  ;;  %v1542_v51 = vsub.f32 %v1520_v22, %v1464_v30 }
  0x79   : > { %2427 = vst [vmem:[#allocation31_spill] sm:$0xff] %v1538_v46 }
  0x7a   : > { %2428 = vst [vmem:[#allocation32_spill] sm:$0xff] %v1542_v51 }
  0x7c   : > { %v386_v47 = vpop.permute.xlu1 %385 }
  0x7d   : > { %v1545_v52 = vsub.f32 %v386_v47, %v1476_v35  ;;  %v1548_v53 = vsub.f32 %v386_v47, %v1479_v39  ;;  %v255_v2 = vpop.permute.xlu0 %254  ;;  %v1551_v3 = vsub.f32 %v386_v47, %v1481_v40  ;;  %v1563_v8 = vsub.f32 %v386_v47, %v1483_v41 }
  0x7e   : > { %v1554_v4 = vsub.f32 %v255_v2, %v1462_v28  ;;  %v1557_v5 = vsub.f32 %v255_v2, %v1464_v30  ;;  %v1560_v7 = vsub.f32 %v255_v2, %v1466_v19  ;;  %v1566_v9 = vsub.f32 %v255_v2, %v1468_v32 }
  0x7f   : > { %2429 = vst [vmem:[#allocation33_spill] sm:$0xff] %v1548_v53  ;;  %v1569_v11 = vsub.f32 %v255_v2, %v1470_v33  ;;  %v1572_v12 = vsub.f32 %v255_v2, %v1472_v34  ;;  %v1575_v14 = vsub.f32 %v255_v2, %v1474_v10  ;;  %v1578_v50 = vsub.f32 %v255_v2, %v1500_v55 }
  0x80   : > { %2430 = vst [vmem:[#allocation34_spill] sm:$0xff] %v1551_v3  ;;  %v518_v15 = vpop.permute.xlu2 %517  ;;  %v1581_v16 = vsub.f32 %v386_v47, %v1485_v42  ;;  %v1584_v17 = vsub.f32 %v386_v47, %v1487_v44  ;;  %v1587_v18 = vsub.f32 %v386_v47, %v1489_v45  ;;  %v1603_v53 = vsub.f32 %v386_v47, %v1502_v56 }
  0x81   : > { %2431 = vst [vmem:[#allocation35_spill] sm:$0xff] %v1563_v8  ;;  %v584_v58 = vsub.f32 %v518_v15, %v1498_v54  ;;  %v585_v20 = vsub.f32 %v518_v15, %v1522_v29  ;;  %v586_v21 = vsub.f32 %v518_v15, %v1524_v31  ;;  %v587_v23 = vsub.f32 %v518_v15, %v1526_v6 }
  0x82   : > { %2432 = vst [vmem:[#allocation36_spill] sm:$0xff] %v1578_v50  ;;  %v588_v24 = vsub.f32 %v518_v15, %v1528_v36  ;;  %v589_v62 = vsub.f32 %v518_v15, %v1530_v37  ;;  %v590_v13 = vsub.f32 %v518_v15, %v1532_v38  ;;  %v591_v63 = vsub.f32 %v518_v15, %v1534_v43 }
  0x83   : > { %2433 = vst [vmem:[#allocation37_spill] sm:$0xff] %v1581_v16  ;;  %v840_v25 = vmul.f32 %v584_v58, %v584_v58  ;;  %v841_v26 = vmul.f32 %v585_v20, %v585_v20  ;;  %v842_v27 = vmul.f32 %v586_v21, %v586_v21  ;;  %v843_v2 = vmul.f32 %v587_v23, %v587_v23 }
  0x84   : > { %2434 = vst [vmem:[#allocation38_spill] sm:$0xff] %v1584_v17  ;;  %v390_v51 = vpop.permute.xlu1 %389  ;;  %v844_v46 = vmul.f32 %v588_v24, %v588_v24  ;;  %v845_v22 = vmul.f32 %v589_v62, %v589_v62  ;;  %v847_v17 = vmul.f32 %v591_v63, %v591_v63 }
  0x85   : > { %2435 = vst [vmem:[#allocation39_spill] sm:$0xff] %v1587_v18  ;;  %v846_v18 = vmul.f32 %v590_v13, %v590_v13  ;;  %v452_v50 = vsub.f32 %v390_v51, %v1476_v35  ;;  %v260_v16 = vpop.permute.xlu0 %259  ;;  %v1598_v8 = vadd.f32 %v840_v25, %v776_v57  ;;  %v1600_v3 = vadd.f32 %v841_v26, %v777_v59 }
  0x86   : > { %v453_v15 = vsub.f32 %v390_v51, %v1479_v39  ;;  %v328_v58 = vsub.f32 %v260_v16, %v1462_v28  ;;  %v329_v20 = vsub.f32 %v260_v16, %v1464_v30  ;;  %v1608_v21 = vadd.f32 %v842_v27, %v778_v60 }
  0x87   : > { %2436 = vst [vmem:[#allocation40_spill] sm:$0xff] %v1598_v8  ;;  %v1610_v23 = vadd.f32 %v843_v2, %v779_v61  ;;  %v1612_v24 = vadd.f32 %v844_v46, %v780_v0  ;;  %v1614_v62 = vadd.f32 %v845_v22, %v781_v48  ;;  %v1616_v57 = vadd.f32 %v846_v18, %v782_v1 }
  0x88   : > { %2437 = vst [vmem:[#allocation41_spill] sm:$0xff] %v1600_v3  ;;  %v1618_v59 = vpop.permute.xlu2 %521  ;;  %v1620_v47 = vadd.f32 %v847_v17, %v783_v49  ;;  %v1100_v13 = vmin.f32 %v1598_v8, %v1600_v3  ;;  %v330_v63 = vsub.f32 %v260_v16, %v1466_v19  ;;  %v331_v60 = vsub.f32 %v260_v16, %v1468_v32 }
  0x89   : > { %2438 = vst [vmem:[#allocation42_spill] sm:$0xff] %v1608_v21  ;;  %v332_v61 = vsub.f32 %v260_v16, %v1470_v33  ;;  %v333_v0 = vsub.f32 %v260_v16, %v1472_v34  ;;  %v334_v22 = vsub.f32 %v260_v16, %v1474_v10  ;;  %v335_v46 = vsub.f32 %v260_v16, %v1500_v55 }
  0x8a   : > { %2439 = vst [vmem:[#allocation43_spill] sm:$0xff] %v1610_v23  ;;  %v1101_v48 = vmin.f32 %v1100_v13, %v1608_v21  ;;  %v454_v1 = vsub.f32 %v390_v51, %v1481_v40  ;;  %v455_v49 = vsub.f32 %v390_v51, %v1483_v41  ;;  %v456_v17 = vsub.f32 %v390_v51, %v1485_v42 }
  0x8b   : > { %2440 = vst [vmem:[#allocation44_spill] sm:$0xff] %v1612_v24  ;;  %v457_v18 = vsub.f32 %v390_v51, %v1487_v44  ;;  %v458_v25 = vsub.f32 %v390_v51, %v1489_v45  ;;  %v459_v26 = vsub.f32 %v390_v51, %v1502_v56  ;;  %v640_v27 = vmul.f32 %v328_v58, %v328_v58 }
  0x8c   : > { %2441 = vst [vmem:[#allocation45_spill] sm:$0xff] %v1614_v62  ;;  %v1102_v2 = vmin.f32 %v1101_v48, %v1610_v23  ;;  %v641_v8 = vmul.f32 %v329_v20, %v329_v20  ;;  %v642_v3 = vmul.f32 %v330_v63, %v330_v63  ;;  %v643_v16 = vmul.f32 %v331_v60, %v331_v60 }
  0x8d   : > { %2442 = vst [vmem:[#allocation46_spill] sm:$0xff] %v1616_v57  ;;  %v644_v13 = vmul.f32 %v332_v61, %v332_v61  ;;  %v645_v21 = vmul.f32 %v333_v0, %v333_v0  ;;  %v646_v40 = vmul.f32 %v334_v22, %v334_v22  ;;  %v647_v41 = vmul.f32 %v335_v46, %v335_v46 }
  0x8e   : > { %2443 = vst [vmem:[#allocation47_spill] sm:$0xff] %v1618_v59  ;;  %v1638_v59 = vpop.permute.xlu0 %274  ;;  %v514_v55 = vpop.permute.xlu1 %513  ;;  %v1103_v58 = vmin.f32 %v1102_v2, %v1612_v24  ;;  %v704_v20 = vmul.f32 %v452_v50, %v452_v50  ;;  %v705_v0 = vmul.f32 %v453_v15, %v453_v15  ;;  %v706_v50 = vmul.f32 %v454_v1, %v454_v1 }
  0x8f   : > { %2444 = vst [vmem:[#allocation48_spill] sm:$0xff] %v1620_v47  ;;  %v1642_v44 = vsub.f32 %v1638_v59, %v1462_v28  ;;  %v1646_v51 = vsub.f32 %v1638_v59, %v1464_v30  ;;  %v576_v63 = vsub.f32 %v514_v55, %v1498_v54  ;;  %v577_v60 = vsub.f32 %v514_v55, %v1522_v29 }
  0x90   : > { %2445 = vst [vmem:[#allocation49_spill] sm:$0xff] %v1638_v59  ;;  %v578_v61 = vsub.f32 %v514_v55, %v1524_v31  ;;  %v1104_v22 = vmin.f32 %v1103_v58, %v1614_v62  ;;  %v579_v46 = vsub.f32 %v514_v55, %v1526_v6  ;;  %v580_v48 = vsub.f32 %v514_v55, %v1528_v36 }
  0x91   : > { %2446 = vst [vmem:[#allocation50_spill] sm:$0xff] %v1642_v44  ;;  %v581_v44 = vsub.f32 %v514_v55, %v1530_v37  ;;  %v1656_v59 = vpop.permute.xlu2 %405  ;;  %v582_v2 = vsub.f32 %v514_v55, %v1532_v38  ;;  %v708_v24 = vmul.f32 %v456_v17, %v456_v17  ;;  %v583_v58 = vsub.f32 %v514_v55, %v1534_v43 }
  0x92   : > { %2447 = vst [vmem:[#allocation51_spill] sm:$0xff] %v1646_v51  ;;  %v707_v51 = vmul.f32 %v455_v49, %v455_v49  ;;  %v1105_v23 = vmin.f32 %v1104_v22, %v1616_v57  ;;  %v1662_v15 = vsub.f32 %v1656_v59, %v1476_v35  ;;  %v709_v62 = vmul.f32 %v457_v18, %v457_v18 }
  0x93   : > { %2448 = vst [vmem:[#allocation52_spill] sm:$0xff] %v1656_v59  ;;  %v1667_v56 = vsub.f32 %v1656_v59, %v1479_v39  ;;  %v710_v45 = vmul.f32 %v458_v25, %v458_v25  ;;  %v711_v42 = vmul.f32 %v459_v26, %v459_v26  ;;  %v768_v10 = vadd.f32 %v704_v20, %v640_v27 }
  0x94   : > { %2449 = vst [vmem:[#allocation53_spill] sm:$0xff] %v1662_v15  ;;  %v1106_v1 = vmin.f32 %v1105_v23, %v1620_v47  ;;  %v769_v49 = vadd.f32 %v705_v0, %v641_v8  ;;  %v770_v17 = vadd.f32 %v706_v50, %v642_v3  ;;  %v771_v34 = vadd.f32 %v707_v51, %v643_v16 }
  0x95   : > { %2450 = vst [vmem:[#allocation54_spill] sm:$0xff] %v1667_v56  ;;  %v772_v22 = vadd.f32 %v708_v24, %v644_v13  ;;  %v773_v57 = vadd.f32 %v709_v62, %v645_v21  ;;  %v774_v33 = vadd.f32 %v710_v45, %v646_v40  ;;  %v832_v32 = vmul.f32 %v576_v63, %v576_v63 }
  0x96   : > { %1107 = vmin.xlane.f32.xlu0 %v1106_v1  ;;  %v833_v15 = vmul.f32 %v577_v60, %v577_v60  ;;  %v834_v55 = vmul.f32 %v578_v61, %v578_v61  ;;  %v835_v18 = vmul.f32 %v579_v46, %v579_v46  ;;  %v836_v19 = vmul.f32 %v580_v48, %v580_v48  ;;  %v510_v26 = vpop.permute.xlu0 %509 }
  0x97   : > { %v837_v30 = vmul.f32 %v581_v44, %v581_v44  ;;  %v838_v59 = vmul.f32 %v582_v2, %v582_v2  ;;  %v839_v56 = vmul.f32 %v583_v58, %v583_v58  ;;  %v1670_v25 = vadd.f32 %v832_v32, %v768_v10  ;;  %v1672_v27 = vpop.permute.xlu1 %397  ;;  %v2454_v2 = vld [vmem:[#allocation33_spill] sm:$0xff] }
  0x98   : > { %v775_v8 = vadd.f32 %v711_v42, %v647_v41  ;;  %v1674_v3 = vadd.f32 %v833_v15, %v769_v49  ;;  %v1676_v23 = vadd.f32 %v834_v55, %v770_v17  ;;  %v1678_v40 = vadd.f32 %v835_v18, %v771_v34  ;;  %v2462_v18 = vld [vmem:[#allocation39_spill] sm:$0xff] }
  0x99   : > { %v1682_v45 = vsub.f32 %v1672_v27, %v1476_v35  ;;  %v1686_v44 = vsub.f32 %v1672_v27, %v1479_v39  ;;  %v1688_v32 = vpop.permute.xlu2 %409  ;;  %v1690_v10 = vadd.f32 %v836_v19, %v772_v22  ;;  %v1692_v21 = vadd.f32 %v837_v30, %v773_v57  ;;  %v2461_v22 = vld [vmem:[#allocation38_spill] sm:$0xff] }
  0x9a   : > { %2451 = vst [vmem:[#allocation55_spill] sm:$0xff] %v1688_v32  ;;  %v1696_v41 = vsub.f32 %v1688_v32, %v1476_v35  ;;  %v1700_v34 = vsub.f32 %v1688_v32, %v1479_v39  ;;  %v1702_v42 = vadd.f32 %v838_v59, %v774_v33  ;;  %v1091_v24 = vmin.f32 %v1670_v25, %v1674_v3 }
  0x9b   : > { %v1706_v62 = vadd.f32 %v839_v56, %v775_v8  ;;  %v568_v19 = vsub.f32 %v510_v26, %v1498_v54  ;;  %v569_v30 = vsub.f32 %v510_v26, %v1522_v29  ;;  %v570_v57 = vsub.f32 %v510_v26, %v1524_v31 }
  0x9c   : > { %2452 = vst [vmem:[#allocation56_spill] sm:$0xff] %v1696_v41  ;;  %v1092_v16 = vmin.f32 %v1091_v24, %v1676_v23  ;;  %v571_v13 = vsub.f32 %v510_v26, %v1526_v6  ;;  %v572_v51 = vsub.f32 %v510_v26, %v1528_v36  ;;  %v573_v33 = vsub.f32 %v510_v26, %v1530_v37 }
  0x9d   : > { %2453 = vst [vmem:[#allocation57_spill] sm:$0xff] %v1700_v34  ;;  %v574_v59 = vsub.f32 %v510_v26, %v1532_v38  ;;  %v575_v20 = vsub.f32 %v510_v26, %v1534_v43  ;;  %v632_v56 = vmul.f32 %v1554_v4, %v1554_v4  ;;  %v633_v63 = vmul.f32 %v1557_v5, %v1557_v5 }
  0x9e   : > { %v1093_v60 = vmin.f32 %v1092_v16, %v1678_v40  ;;  %v634_v61 = vmul.f32 %v1560_v7, %v1560_v7  ;;  %v635_v0 = vmul.f32 %v1566_v9, %v1566_v9  ;;  %v636_v46 = vmul.f32 %v1569_v11, %v1569_v11  ;;  %v2456_v9 = vld [vmem:[#allocation34_spill] sm:$0xff]  ;;  %v2457_v11 = vld [vmem:[#allocation35_spill] sm:$0xff]  ;;  %v1759_v24 = vpop.permute.xlu0 %525 }
  0x9f   : > { %v637_v48 = vmul.f32 %v1572_v12, %v1572_v12  ;;  %v638_v4 = vmul.f32 %v1575_v14, %v1575_v14  ;;  %v696_v5 = vmul.f32 %v1545_v52, %v1545_v52  ;;  %v697_v50 = vmul.f32 %v2454_v2, %v2454_v2  ;;  %v1736_v15 = vpop.permute.xlu1 %401  ;;  %v2458_v12 = vld [vmem:[#allocation37_spill] sm:$0xff]  ;;  %v2460_v52 = vld [vmem:[#allocation36_spill] sm:$0xff] }
  0xa0   : > { %2455 = vst [vmem:[#allocation33_spill] sm:$0xff] %v1736_v15  ;;  %v1094_v7 = vmin.f32 %v1093_v60, %v1690_v10  ;;  %v698_v58 = vmul.f32 %v2456_v9, %v2456_v9  ;;  %v699_v1 = vmul.f32 %v2457_v11, %v2457_v11  ;;  %v700_v49 = vmul.f32 %v2458_v12, %v2458_v12 }
  0xa1   : > { %v1747_v14 = vsub.f32 %v1736_v15, %v1476_v35  ;;  %v639_v17 = vmul.f32 %v2460_v52, %v2460_v52  ;;  %v701_v55 = vmul.f32 %v2461_v22, %v2461_v22  ;;  %v702_v26 = vmul.f32 %v2462_v18, %v2462_v18  ;;  %2464 = vst [vmem:[#allocation37_spill] sm:$0xff] %v1759_v24 }
  0xa2   : > { %v1757_v8 = vsub.f32 %v1736_v15, %v1479_v39  ;;  %v1095_v16 = vmin.f32 %v1094_v7, %v1692_v21  ;;  %v1762_v60 = vpop.permute.xlu2 %289  ;;  %v703_v2 = vmul.f32 %v1603_v53, %v1603_v53  ;;  %v760_v9 = vadd.f32 %v696_v5, %v632_v56 }
  0xa3   : > { %2459 = vst [vmem:[#allocation34_spill] sm:$0xff] %v1747_v14  ;;  %v1768_v11 = vsub.f32 %v1762_v60, %v1462_v28  ;;  %v761_v12 = vadd.f32 %v697_v50, %v633_v63  ;;  %v762_v52 = vadd.f32 %v698_v58, %v634_v61  ;;  %v763_v22 = vadd.f32 %v699_v1, %v635_v0  ;;  %v2484_v50 = vld [vmem:[#allocation18_spill] sm:$0xff] }
  0xa4   : > { %2463 = vst [vmem:[#allocation35_spill] sm:$0xff] %v1757_v8  ;;  %v1096_v18 = vmin.f32 %v1095_v16, %v1702_v42  ;;  %v764_v34 = vadd.f32 %v700_v49, %v636_v46  ;;  %v765_v41 = vadd.f32 %v701_v55, %v637_v48  ;;  %v766_v32 = vadd.f32 %v702_v26, %v638_v4  ;;  %v2476_v26 = vld [vmem:[#allocation10_spill] sm:$0xff]  ;;  %v2485_v48 = vld [vmem:[#allocation19_spill] sm:$0xff] }
  0xa5   : > { %2465 = vst [vmem:[#allocation36_spill] sm:$0xff] %v1762_v60  ;;  %v767_v8 = vadd.f32 %v703_v2, %v639_v17  ;;  %v824_v7 = vmul.f32 %v568_v19, %v568_v19  ;;  %v825_v14 = vmul.f32 %v569_v30, %v569_v30  ;;  %v826_v24 = vmul.f32 %v570_v57, %v570_v57  ;;  %v2475_v17 = vld [vmem:[#allocation23_spill] sm:$0xff]  ;;  %v2478_v2 = vld [vmem:[#allocation12_spill] sm:$0xff] }
  0xa6   : > { %2466 = vst [vmem:[#allocation38_spill] sm:$0xff] %v1768_v11  ;;  %v1097_v15 = vmin.f32 %v1096_v18, %v1706_v62  ;;  %v827_v53 = vmul.f32 %v571_v13, %v571_v13  ;;  %v828_v56 = vmul.f32 %v572_v51, %v572_v51  ;;  %v829_v5 = vmul.f32 %v573_v33, %v573_v33  ;;  %v2480_v18 = vld [vmem:[#allocation21_spill] sm:$0xff] }
  0xa7   : > { %v830_v39 = vmul.f32 %v574_v59, %v574_v59  ;;  %v831_v47 = vmul.f32 %v575_v20, %v575_v20  ;;  %v1772_v11 = vadd.f32 %v824_v7, %v760_v9  ;;  %v1774_v63 = vadd.f32 %v825_v14, %v761_v12  ;;  %v2468_v59 = vld [vmem:[#allocation8_spill] sm:$0xff]  ;;  %v2474_v14 = vld [vmem:[#allocation9_spill] sm:$0xff]  ;;  %v2481_v7 = vld [vmem:[#allocation15_spill] sm:$0xff] }
  0xa8   : > { %1098 = vmin.xlane.f32.xlu2 %v1097_v15  ;;  %v1776_v61 = vadd.f32 %v826_v24, %v762_v52  ;;  %v1778_v0 = vadd.f32 %v827_v53, %v763_v22  ;;  %v1780_v46 = vadd.f32 %v828_v56, %v764_v34  ;;  %v1782_v19 = vadd.f32 %v829_v5, %v765_v41  ;;  %v1784_v30 = vpop.permute.xlu1 %279  ;;  %v2477_v24 = vld [vmem:[#allocation11_spill] sm:$0xff]  ;;  %v2479_v52 = vld [vmem:[#allocation13_spill] sm:$0xff]  ;;  %v2482_v56 = vld [vmem:[#allocation16_spill] sm:$0xff] }
  0xa9   : > { %2467 = vst [vmem:[#allocation39_spill] sm:$0xff] %v1784_v30  ;;  %v1786_v57 = vadd.f32 %v830_v39, %v766_v32  ;;  %v1788_v13 = vadd.f32 %v831_v47, %v767_v8  ;;  %v1082_v33 = vmin.f32 %v1772_v11, %v1774_v63  ;;  %v1796_v20 = vsub.f32 %v1762_v60, %v2468_v59  ;;  %v1806_v32 = vpop.permute.xlu0 %413  ;;  %v2486_v47 = vld [vmem:[#allocation22_spill] sm:$0xff]  ;;  %v2487_v39 = vld [vmem:[#allocation47_spill] sm:$0xff] }
  0xaa   : > { %v1800_v41 = vsub.f32 %v1784_v30, %v1462_v28  ;;  %2471 = vst [vmem:[#allocation60_spill] sm:$0xff] %v1806_v32  ;;  %v1818_v15 = vsub.f32 %v1784_v30, %v2468_v59  ;;  %v1825_v49 = vsub.f32 %v1806_v32, %v1476_v35  ;;  %v346_v55 = vsub.f32 %v2475_v17, %v2474_v14  ;;  %v2488_v59 = vld [vmem:[#allocation31_spill] sm:$0xff] }
  0xab   : > { %2469 = vst [vmem:[#allocation58_spill] sm:$0xff] %v1796_v20  ;;  %v1083_v58 = vmin.f32 %v1082_v33, %v1776_v61  ;;  %v347_v8 = vsub.f32 %v2475_v17, %v2476_v26  ;;  %v348_v16 = vsub.f32 %v2475_v17, %v2477_v24  ;;  %v349_v9 = vsub.f32 %v2475_v17, %v2478_v2  ;;  %v2483_v33 = vld [vmem:[#allocation17_spill] sm:$0xff] }
  0xac   : > { %2470 = vst [vmem:[#allocation59_spill] sm:$0xff] %v1800_v41  ;;  %v350_v22 = vsub.f32 %v2475_v17, %v2479_v52  ;;  %v351_v35 = vsub.f32 %v2475_v17, %v2480_v18  ;;  %v470_v53 = vsub.f32 %v1672_v27, %v2481_v7  ;;  %v471_v5 = vsub.f32 %v1672_v27, %v2482_v56 }
  0xad   : > { %2472 = vst [vmem:[#allocation61_spill] sm:$0xff] %v1818_v15  ;;  %v1084_v12 = vmin.f32 %v1083_v58, %v1778_v0  ;;  %v472_v1 = vsub.f32 %v1672_v27, %v2483_v33  ;;  %v473_v4 = vsub.f32 %v1672_v27, %v2484_v50  ;;  %v474_v58 = vsub.f32 %v1672_v27, %v2485_v48 }
  0xae   : > { %2473 = vst [vmem:[#allocation62_spill] sm:$0xff] %v1825_v49  ;;  %v475_v17 = vsub.f32 %v1672_v27, %v2486_v47  ;;  %v592_v51 = vsub.f32 %v2487_v39, %v1498_v54  ;;  %v593_v15 = vsub.f32 %v2487_v39, %v1522_v29  ;;  %v594_v41 = vsub.f32 %v2487_v39, %v1524_v31  ;;  %v2489_v29 = vld [vmem:[#allocation32_spill] sm:$0xff] }
  0xaf   : > { %v1085_v34 = vmin.f32 %v1084_v12, %v1780_v46  ;;  %v595_v30 = vsub.f32 %v2487_v39, %v1526_v6  ;;  %v596_v49 = vsub.f32 %v2487_v39, %v1528_v36  ;;  %v597_v12 = vsub.f32 %v2487_v39, %v1530_v37 }
  0xb0   : > { %v598_v20 = vsub.f32 %v2487_v39, %v1532_v38  ;;  %v599_v60 = vsub.f32 %v2487_v39, %v1534_v43  ;;  %v656_v31 = vmul.f32 %v2488_v59, %v2488_v59  ;;  %v657_v6 = vmul.f32 %v2489_v29, %v2489_v29 }
  0xb1   : > { %v1086_v27 = vmin.f32 %v1085_v34, %v1782_v19  ;;  %v658_v54 = vmul.f32 %v346_v55, %v346_v55  ;;  %v659_v47 = vmul.f32 %v347_v8, %v347_v8  ;;  %v660_v36 = vmul.f32 %v348_v16, %v348_v16 }
  0xb2   : > { %v661_v37 = vmul.f32 %v349_v9, %v349_v9  ;;  %v662_v50 = vmul.f32 %v350_v22, %v350_v22  ;;  %v663_v34 = vmul.f32 %v351_v35, %v351_v35  ;;  %v720_v38 = vmul.f32 %v1682_v45, %v1682_v45 }
  0xb3   : > { %v1087_v48 = vmin.f32 %v1086_v27, %v1786_v57  ;;  %v721_v39 = vmul.f32 %v1686_v44, %v1686_v44  ;;  %v722_v43 = vmul.f32 %v470_v53, %v470_v53  ;;  %v723_v33 = vmul.f32 %v471_v5, %v471_v5 }
  0xb4   : > { %v724_v56 = vmul.f32 %v472_v1, %v472_v1  ;;  %v725_v29 = vmul.f32 %v473_v4, %v473_v4  ;;  %v726_v55 = vmul.f32 %v474_v58, %v474_v58  ;;  %v727_v8 = vmul.f32 %v475_v17, %v475_v17 }
  0xb5   : > { %v1088_v59 = vmin.f32 %v1087_v48, %v1788_v13  ;;  %v784_v16 = vadd.f32 %v720_v38, %v656_v31  ;;  %v785_v7 = vadd.f32 %v721_v39, %v657_v6  ;;  %v786_v27 = vadd.f32 %v722_v43, %v658_v54  ;;  %v2491_v43 = vld [vmem:[#allocation41_spill] sm:$0xff] }
  0xb6   : > { %v787_v9 = vadd.f32 %v723_v33, %v659_v47  ;;  %v788_v22 = vadd.f32 %v724_v56, %v660_v36  ;;  %v789_v35 = vadd.f32 %v725_v29, %v661_v37  ;;  %v790_v18 = vadd.f32 %v726_v55, %v662_v50  ;;  %v2495_v47 = vld [vmem:[#allocation43_spill] sm:$0xff]  ;;  %v2507_v33 = vld [vmem:[#allocation14_spill] sm:$0xff]  ;;  %v2512_v55 = vld [vmem:[#allocation49_spill] sm:$0xff] }
  0xb7   : > { %1089 = vmin.xlane.f32.xlu1 %v1088_v59  ;;  %v791_v45 = vadd.f32 %v727_v8, %v663_v34  ;;  %v848_v52 = vmul.f32 %v592_v51, %v592_v51  ;;  %v849_v2 = vmul.f32 %v593_v15, %v593_v15  ;;  %v850_v44 = vmul.f32 %v594_v41, %v594_v41  ;;  %v2493_v51 = vld [vmem:[#allocation42_spill] sm:$0xff]  ;;  %v2509_v34 = vld [vmem:[#allocation40_spill] sm:$0xff]  ;;  %v2529_v56 = vld [vmem:[#allocation27_spill] sm:$0xff] }
  0xb8   : > { %v851_v53 = vmul.f32 %v595_v30, %v595_v30  ;;  %v852_v5 = vmul.f32 %v596_v49, %v596_v49  ;;  %v853_v24 = vmul.f32 %v597_v12, %v597_v12  ;;  %v854_v48 = vmul.f32 %v598_v20, %v598_v20  ;;  %v2497_v49 = vld [vmem:[#allocation44_spill] sm:$0xff] }
  0xb9   : > { %v855_v1 = vmul.f32 %v599_v60, %v599_v60  ;;  %v1880_v4 = vadd.f32 %v848_v52, %v784_v16  ;;  %v1882_v58 = vadd.f32 %v849_v2, %v785_v7  ;;  %v1884_v31 = vadd.f32 %v850_v44, %v786_v27  ;;  %v2513_v27 = vld [vmem:[#allocation11_spill] sm:$0xff]  ;;  %v2516_v44 = vld [vmem:[#allocation21_spill] sm:$0xff] }
  0xba   : > { %v1886_v54 = vadd.f32 %v851_v53, %v787_v9  ;;  %v1888_v6 = vadd.f32 %v852_v5, %v788_v22  ;;  %v1890_v36 = vadd.f32 %v853_v24, %v789_v35  ;;  %v1892_v37 = vadd.f32 %v854_v48, %v790_v18  ;;  %v2514_v22 = vld [vmem:[#allocation12_spill] sm:$0xff]  ;;  %v2517_v5 = vld [vmem:[#allocation15_spill] sm:$0xff]  ;;  %v2518_v48 = vld [vmem:[#allocation33_spill] sm:$0xff] }
  0xbb   : > { %v1894_v38 = vadd.f32 %v855_v1, %v791_v45  ;;  %v2492_v60 = vmin.f32 %v1774_v63, %v1674_v3  ;;  %v2494_v20 = vmin.f32 %v1776_v61, %v1676_v23  ;;  %v2496_v50 = vmin.f32 %v1778_v0, %v1678_v40  ;;  %v2499_v3 = vld [vmem:[#allocation45_spill] sm:$0xff]  ;;  %v2501_v23 = vld [vmem:[#allocation46_spill] sm:$0xff]  ;;  %v2503_v40 = vld [vmem:[#allocation48_spill] sm:$0xff] }
  0xbc   : > { %v2498_v24 = vmin.f32 %v1780_v46, %v1690_v10  ;;  %v2500_v63 = vmin.f32 %v1782_v19, %v1692_v21  ;;  %v2502_v61 = vmin.f32 %v1786_v57, %v1702_v42  ;;  %v2504_v0 = vmin.f32 %v1788_v13, %v1706_v62  ;;  %v1938_v10 = vpop.permute.xlu1 %284  ;;  %v2515_v45 = vld [vmem:[#allocation13_spill] sm:$0xff]  ;;  %v2530_v13 = vld [vmem:[#allocation28_spill] sm:$0xff]  ;;  %v2532_v19 = vld [vmem:[#allocation30_spill] sm:$0xff] }
  0xbd   : > { %2490 = vst [vmem:[#allocation9_spill] sm:$0xff] %v1894_v38  ;;  %v1900_v30 = vmin.f32 %v2492_v60, %v2491_v43  ;;  %v1906_v41 = vmin.f32 %v2494_v20, %v2493_v51  ;;  %v1912_v15 = vmin.f32 %v2496_v50, %v2495_v47  ;;  %v1109_v42 = vmin.f32 %v1880_v4, %v1882_v58  ;;  %v2519_v43 = vld [vmem:[#allocation16_spill] sm:$0xff]  ;;  %v2520_v51 = vld [vmem:[#allocation17_spill] sm:$0xff]  ;;  %v2521_v47 = vld [vmem:[#allocation18_spill] sm:$0xff] }
  0xbe   : > { %v1918_v2 = vmin.f32 %v2498_v24, %v2497_v49  ;;  %v1924_v52 = vmin.f32 %v2500_v63, %v2499_v3  ;;  %v1930_v18 = vmin.f32 %v2502_v61, %v2501_v23  ;;  %v1936_v7 = vmin.f32 %v2504_v0, %v2503_v40  ;;  %2506 = vst [vmem:[#allocation10_spill] sm:$0xff] %v1938_v10  ;;  %v2522_v24 = vld [vmem:[#allocation19_spill] sm:$0xff]  ;;  %v2523_v63 = vld [vmem:[#allocation22_spill] sm:$0xff]  ;;  %v2524_v61 = vld [vmem:[#allocation20_spill] sm:$0xff] }
  0xbf   : > { %v1958_v17 = vsub.f32 %v1806_v32, %v2507_v33  ;;  %v1110_v12 = vmin.f32 %v1109_v42, %v1884_v31  ;;  %v2510_v39 = vmin.f32 %v1772_v11, %v1670_v25  ;;  %v1969_v29 = vsub.f32 %v1938_v10, %v1462_v28  ;;  %v2525_v40 = vld [vmem:[#allocation37_spill] sm:$0xff]  ;;  %v2526_v42 = vld [vmem:[#allocation24_spill] sm:$0xff]  ;;  %v2533_v46 = vld [vmem:[#allocation50_spill] sm:$0xff] }
  0xc0   : > { %2505 = vst [vmem:[#allocation23_spill] sm:$0xff] %v1936_v7  ;;  %v354_v8 = vsub.f32 %v2512_v55, %v2474_v14  ;;  %v355_v16 = vsub.f32 %v2512_v55, %v2476_v26  ;;  %v356_v9 = vsub.f32 %v2512_v55, %v2513_v27  ;;  %v357_v35 = vsub.f32 %v2512_v55, %v2514_v22  ;;  %v2531_v62 = vld [vmem:[#allocation29_spill] sm:$0xff]  ;;  %v2534_v7 = vld [vmem:[#allocation51_spill] sm:$0xff] }
  0xc1   : > { %2508 = vst [vmem:[#allocation47_spill] sm:$0xff] %v1958_v17  ;;  %v1965_v59 = vmin.f32 %v2510_v39, %v2509_v34  ;;  %v1111_v25 = vmin.f32 %v1110_v12, %v1886_v54  ;;  %v358_v28 = vsub.f32 %v2512_v55, %v2515_v45  ;;  %v359_v53 = vsub.f32 %v2512_v55, %v2516_v44  ;;  %v2527_v12 = vld [vmem:[#allocation25_spill] sm:$0xff]  ;;  %v2528_v39 = vld [vmem:[#allocation26_spill] sm:$0xff] }
  0xc2   : > { %2511 = vst [vmem:[#allocation31_spill] sm:$0xff] %v1969_v29  ;;  %v478_v1 = vsub.f32 %v2518_v48, %v2517_v5  ;;  %v479_v60 = vsub.f32 %v2518_v48, %v2519_v43  ;;  %v480_v20 = vsub.f32 %v2518_v48, %v2520_v51  ;;  %v481_v50 = vsub.f32 %v2518_v48, %v2521_v47 }
  0xc3   : > { %v1112_v49 = vmin.f32 %v1111_v25, %v1888_v6  ;;  %v482_v3 = vsub.f32 %v2518_v48, %v2522_v24  ;;  %v483_v23 = vsub.f32 %v2518_v48, %v2523_v63  ;;  %v600_v0 = vsub.f32 %v2525_v40, %v2524_v61  ;;  %v2535_v63 = vld [vmem:[#allocation34_spill] sm:$0xff]  ;;  %v2536_v24 = vld [vmem:[#allocation35_spill] sm:$0xff] }
  0xc4   : > { %v601_v33 = vsub.f32 %v2525_v40, %v2526_v42  ;;  %v602_v34 = vsub.f32 %v2525_v40, %v2527_v12  ;;  %v603_v55 = vsub.f32 %v2525_v40, %v2528_v39  ;;  %v604_v25 = vsub.f32 %v2525_v40, %v2529_v56 }
  0xc5   : > { %v1113_v11 = vmin.f32 %v1112_v49, %v1890_v36  ;;  %v605_v48 = vsub.f32 %v2525_v40, %v2530_v13  ;;  %v606_v57 = vsub.f32 %v2525_v40, %v2531_v62  ;;  %v607_v21 = vsub.f32 %v2525_v40, %v2532_v19 }
  0xc6   : > { %v664_v29 = vmul.f32 %v2533_v46, %v2533_v46  ;;  %v665_v17 = vmul.f32 %v2534_v7, %v2534_v7  ;;  %v666_v39 = vmul.f32 %v354_v8, %v354_v8  ;;  %v667_v12 = vmul.f32 %v355_v16, %v355_v16 }
  0xc7   : > { %v1114_v56 = vmin.f32 %v1113_v11, %v1892_v37  ;;  %v668_v49 = vmul.f32 %v356_v9, %v356_v9  ;;  %v669_v42 = vmul.f32 %v357_v35, %v357_v35  ;;  %v670_v61 = vmul.f32 %v358_v28, %v358_v28 }
  0xc8   : > { %v671_v13 = vmul.f32 %v359_v53, %v359_v53  ;;  %v728_v62 = vmul.f32 %v2535_v63, %v2535_v63  ;;  %v729_v40 = vmul.f32 %v2536_v24, %v2536_v24  ;;  %v730_v19 = vmul.f32 %v478_v1, %v478_v1 }
  0xc9   : > { %v1115_v46 = vmin.f32 %v1114_v56, %v1894_v38  ;;  %v731_v47 = vmul.f32 %v479_v60, %v479_v60  ;;  %v732_v51 = vmul.f32 %v480_v20, %v480_v20  ;;  %v733_v7 = vmul.f32 %v481_v50, %v481_v50 }
  0xca   : > { %v734_v8 = vmul.f32 %v482_v3, %v482_v3  ;;  %v735_v16 = vmul.f32 %v483_v23, %v483_v23  ;;  %v792_v43 = vadd.f32 %v728_v62, %v664_v29  ;;  %v793_v11 = vadd.f32 %v729_v40, %v665_v17  ;;  %v2559_v40 = vld [vmem:[#allocation17_spill] sm:$0xff] }
  0xcb   : > { %1116 = vmin.xlane.f32.xlu2 %v1115_v46  ;;  %v794_v9 = vadd.f32 %v730_v19, %v666_v39  ;;  %v795_v35 = vadd.f32 %v731_v47, %v667_v12  ;;  %v796_v28 = vadd.f32 %v732_v51, %v668_v49  ;;  %v797_v53 = vadd.f32 %v733_v7, %v669_v42  ;;  %v2537_v19 = vld [vmem:[#allocation8_spill] sm:$0xff]  ;;  %v2554_v12 = vld [vmem:[#allocation13_spill] sm:$0xff]  ;;  %v2556_v39 = vld [vmem:[#allocation15_spill] sm:$0xff] }
  0xcc   : > { %v798_v32 = vadd.f32 %v734_v8, %v670_v61  ;;  %v799_v63 = vadd.f32 %v735_v16, %v671_v13  ;;  %v856_v5 = vmul.f32 %v600_v0, %v600_v0  ;;  %v857_v44 = vmul.f32 %v601_v33, %v601_v33  ;;  %v538_v33 = vpop.permute.xlu2 %537  ;;  %v2560_v7 = vld [vmem:[#allocation18_spill] sm:$0xff]  ;;  %v2561_v16 = vld [vmem:[#allocation19_spill] sm:$0xff] }
  0xcd   : > { %v858_v24 = vmul.f32 %v602_v34, %v602_v34  ;;  %v859_v1 = vmul.f32 %v603_v55, %v603_v55  ;;  %v860_v45 = vmul.f32 %v604_v25, %v604_v25  ;;  %v861_v56 = vmul.f32 %v605_v48, %v605_v48  ;;  %v2557_v55 = vld [vmem:[#allocation60_spill] sm:$0xff] }
  0xce   : > { %v862_v60 = vmul.f32 %v606_v57, %v606_v57  ;;  %v863_v20 = vmul.f32 %v607_v21, %v607_v21  ;;  %v920_v50 = vadd.f32 %v856_v5, %v792_v43  ;;  %v921_v3 = vadd.f32 %v857_v44, %v793_v11  ;;  %v2558_v48 = vld [vmem:[#allocation16_spill] sm:$0xff] }
  0xcf   : > { %v922_v23 = vadd.f32 %v858_v24, %v794_v9  ;;  %v923_v62 = vadd.f32 %v859_v1, %v795_v35  ;;  %v924_v17 = vadd.f32 %v860_v45, %v796_v28  ;;  %v925_v29 = vadd.f32 %v861_v56, %v797_v53  ;;  %v2562_v35 = vld [vmem:[#allocation22_spill] sm:$0xff]  ;;  %v2563_v53 = vld [vmem:[#allocation20_spill] sm:$0xff]  ;;  %v2565_v56 = vld [vmem:[#allocation25_spill] sm:$0xff] }
  0xd0   : > { %v2028_v51 = vsub.f32 %v1938_v10, %v2537_v19  ;;  %v926_v47 = vadd.f32 %v862_v60, %v798_v32  ;;  %v2539_v13 = vmin.f32 %v1900_v30, %v1882_v58  ;;  %v1118_v0 = vmin.f32 %v920_v50, %v921_v3  ;;  %v2564_v24 = vld [vmem:[#allocation24_spill] sm:$0xff] }
  0xd1   : > { %v2035_v42 = vadd.f32 %v863_v20, %v799_v63  ;;  %v2541_v21 = vmin.f32 %v1906_v41, %v1884_v31  ;;  %v2543_v45 = vmin.f32 %v1912_v15, %v1886_v54  ;;  %v2545_v32 = vmin.f32 %v1918_v2, %v1888_v6  ;;  %v2553_v6 = vld [vmem:[#allocation36_spill] sm:$0xff]  ;;  %v2566_v20 = vld [vmem:[#allocation26_spill] sm:$0xff] }
  0xd2   : > { %2538 = vst [vmem:[#allocation32_spill] sm:$0xff] %v2028_v51  ;;  %v2033_v61 = vmin.f32 %v2539_v13, %v921_v3  ;;  %v2547_v58 = vmin.f32 %v1924_v52, %v1890_v36  ;;  %v2549_v31 = vmin.f32 %v1930_v18, %v1892_v37  ;;  %v1119_v43 = vmin.f32 %v1118_v0, %v922_v23  ;;  %v2567_v3 = vld [vmem:[#allocation27_spill] sm:$0xff]  ;;  %v2569_v0 = vld [vmem:[#allocation29_spill] sm:$0xff] }
  0xd3   : > { %v2040_v57 = vmin.f32 %v2541_v21, %v922_v23  ;;  %v2045_v44 = vmin.f32 %v2543_v45, %v923_v62  ;;  %v2050_v5 = vmin.f32 %v2545_v32, %v924_v17  ;;  %v2551_v54 = vmin.f32 %v1965_v59, %v1880_v4  ;;  %v2555_v4 = vld [vmem:[#allocation21_spill] sm:$0xff]  ;;  %v2570_v45 = vld [vmem:[#allocation30_spill] sm:$0xff] }
  0xd4   : > { %2540 = vst [vmem:[#allocation41_spill] sm:$0xff] %v2033_v61  ;;  %v2055_v30 = vmin.f32 %v2547_v58, %v925_v29  ;;  %v2060_v41 = vmin.f32 %v2549_v31, %v926_v47  ;;  %v378_v2 = vsub.f32 %v2553_v6, %v2474_v14  ;;  %v379_v36 = vsub.f32 %v2553_v6, %v2476_v26  ;;  %v2571_v32 = vld [vmem:[#allocation38_spill] sm:$0xff] }
  0xd5   : > { %2542 = vst [vmem:[#allocation42_spill] sm:$0xff] %v2040_v57  ;;  %v2065_v15 = vmin.f32 %v2551_v54, %v920_v50  ;;  %v380_v52 = vsub.f32 %v2553_v6, %v2513_v27  ;;  %v381_v37 = vsub.f32 %v2553_v6, %v2514_v22  ;;  %v1120_v18 = vmin.f32 %v1119_v43, %v923_v62  ;;  %v2568_v62 = vld [vmem:[#allocation28_spill] sm:$0xff]  ;;  %v2572_v31 = vld [vmem:[#allocation58_spill] sm:$0xff] }
  0xd6   : > { %2544 = vst [vmem:[#allocation43_spill] sm:$0xff] %v2045_v44  ;;  %v382_v34 = vsub.f32 %v2553_v6, %v2554_v12  ;;  %v383_v59 = vsub.f32 %v2553_v6, %v2555_v4  ;;  %v502_v25 = vsub.f32 %v2557_v55, %v2556_v39  ;;  %v503_v49 = vsub.f32 %v2557_v55, %v2558_v48 }
  0xd7   : > { %2546 = vst [vmem:[#allocation44_spill] sm:$0xff] %v2050_v5  ;;  %v504_v46 = vsub.f32 %v2557_v55, %v2559_v40  ;;  %v505_v8 = vsub.f32 %v2557_v55, %v2560_v7  ;;  %v506_v11 = vsub.f32 %v2557_v55, %v2561_v16  ;;  %v1121_v9 = vmin.f32 %v1120_v18, %v924_v17 }
  0xd8   : > { %2548 = vst [vmem:[#allocation45_spill] sm:$0xff] %v2055_v30  ;;  %v507_v28 = vsub.f32 %v2557_v55, %v2562_v35  ;;  %v624_v63 = vsub.f32 %v538_v33, %v2563_v53  ;;  %v625_v1 = vsub.f32 %v538_v33, %v2564_v24  ;;  %v626_v60 = vsub.f32 %v538_v33, %v2565_v56 }
  0xd9   : > { %2550 = vst [vmem:[#allocation46_spill] sm:$0xff] %v2060_v41  ;;  %v627_v50 = vsub.f32 %v538_v33, %v2566_v20  ;;  %v628_v23 = vsub.f32 %v538_v33, %v2567_v3  ;;  %v629_v19 = vsub.f32 %v538_v33, %v2568_v62  ;;  %v1122_v13 = vmin.f32 %v1121_v9, %v925_v29  ;;  %v2573_v41 = vld [vmem:[#allocation62_spill] sm:$0xff]  ;;  %v2574_v9 = vld [vmem:[#allocation47_spill] sm:$0xff] }
  0xda   : > { %2552 = vst [vmem:[#allocation48_spill] sm:$0xff] %v2065_v15  ;;  %v630_v21 = vsub.f32 %v538_v33, %v2569_v0  ;;  %v631_v17 = vsub.f32 %v538_v33, %v2570_v45  ;;  %v688_v58 = vmul.f32 %v2571_v32, %v2571_v32  ;;  %v689_v43 = vmul.f32 %v2572_v31, %v2572_v31 }
  0xdb   : > { %v690_v54 = vmul.f32 %v378_v2, %v378_v2  ;;  %v691_v6 = vmul.f32 %v379_v36, %v379_v36  ;;  %v692_v18 = vmul.f32 %v380_v52, %v380_v52  ;;  %v1123_v55 = vmin.f32 %v1122_v13, %v926_v47 }
  0xdc   : > { %v693_v51 = vmul.f32 %v381_v37, %v381_v37  ;;  %v694_v10 = vmul.f32 %v382_v34, %v382_v34  ;;  %v695_v15 = vmul.f32 %v383_v59, %v383_v59  ;;  %v752_v29 = vmul.f32 %v2573_v41, %v2573_v41 }
  0xdd   : > { %v753_v30 = vmul.f32 %v2574_v9, %v2574_v9  ;;  %v754_v33 = vmul.f32 %v502_v25, %v502_v25  ;;  %v755_v5 = vmul.f32 %v503_v49, %v503_v49  ;;  %v1124_v32 = vmin.f32 %v1123_v55, %v2035_v42 }
  0xde   : > { %v756_v44 = vmul.f32 %v504_v46, %v504_v46  ;;  %v757_v57 = vmul.f32 %v505_v8, %v505_v8  ;;  %v758_v31 = vmul.f32 %v506_v11, %v506_v11  ;;  %v759_v2 = vmul.f32 %v507_v28, %v507_v28 }
  0xdf   : > { %v816_v36 = vadd.f32 %v752_v29, %v688_v58  ;;  %v817_v52 = vadd.f32 %v753_v30, %v689_v43  ;;  %v818_v47 = vadd.f32 %v754_v33, %v690_v54  ;;  %1125 = vmin.xlane.f32.xlu1 %v1124_v32  ;;  %v819_v37 = vadd.f32 %v755_v5, %v691_v6 }
  0xe0   : > { %v820_v34 = vadd.f32 %v756_v44, %v692_v18  ;;  %v821_v59 = vadd.f32 %v757_v57, %v693_v51  ;;  %v822_v13 = vadd.f32 %v758_v31, %v694_v10  ;;  %v823_v41 = vadd.f32 %v759_v2, %v695_v15  ;;  %v530_v57 = vpop.permute.xlu1 %529 }
  0xe1   : > { %v880_v61 = vmul.f32 %v624_v63, %v624_v63  ;;  %v881_v38 = vmul.f32 %v625_v1, %v625_v1  ;;  %v882_v9 = vmul.f32 %v626_v60, %v626_v60  ;;  %v883_v25 = vmul.f32 %v627_v50, %v627_v50 }
  0xe2   : > { %v884_v49 = vmul.f32 %v628_v23, %v628_v23  ;;  %v885_v45 = vmul.f32 %v629_v19, %v629_v19  ;;  %v886_v55 = vmul.f32 %v630_v21, %v630_v21  ;;  %v887_v46 = vmul.f32 %v631_v17, %v631_v17  ;;  %v2582_v21 = vld [vmem:[#allocation52_spill] sm:$0xff] }
  0xe3   : > { %v2108_v8 = vadd.f32 %v880_v61, %v816_v36  ;;  %v2110_v11 = vadd.f32 %v881_v38, %v817_v52  ;;  %v2112_v30 = vadd.f32 %v882_v9, %v818_v47  ;;  %v2114_v28 = vadd.f32 %v883_v25, %v819_v37  ;;  %v2581_v61 = vld [vmem:[#allocation39_spill] sm:$0xff]  ;;  %v2583_v47 = vld [vmem:[#allocation30_spill] sm:$0xff] }
  0xe4   : > { %v2116_v44 = vadd.f32 %v884_v49, %v820_v34  ;;  %v2118_v10 = vadd.f32 %v885_v45, %v821_v59  ;;  %v2120_v51 = vadd.f32 %v886_v55, %v822_v13  ;;  %v2122_v5 = vadd.f32 %v887_v46, %v823_v41  ;;  %v2584_v59 = vld [vmem:[#allocation59_spill] sm:$0xff]  ;;  %v2585_v41 = vld [vmem:[#allocation61_spill] sm:$0xff] }
  0xe5   : > { %2575 = vst [vmem:[#allocation14_spill] sm:$0xff] %v2108_v8  ;;  %v1145_v15 = vmin.f32 %v2108_v8, %v2110_v11  ;;  %v362_v38 = vsub.f32 %v2581_v61, %v2474_v14  ;;  %v363_v63 = vsub.f32 %v2581_v61, %v2476_v26  ;;  %v364_v1 = vsub.f32 %v2581_v61, %v2513_v27 }
  0xe6   : > { %2576 = vst [vmem:[#allocation40_spill] sm:$0xff] %v2110_v11  ;;  %v365_v60 = vsub.f32 %v2581_v61, %v2514_v22  ;;  %v366_v50 = vsub.f32 %v2581_v61, %v2554_v12  ;;  %v367_v23 = vsub.f32 %v2581_v61, %v2555_v4  ;;  %v486_v45 = vsub.f32 %v2582_v21, %v2556_v39 }
  0xe7   : > { %2577 = vst [vmem:[#allocation49_spill] sm:$0xff] %v2112_v30  ;;  %v1146_v19 = vmin.f32 %v1145_v15, %v2112_v30  ;;  %v487_v17 = vsub.f32 %v2582_v21, %v2558_v48  ;;  %v488_v58 = vsub.f32 %v2582_v21, %v2559_v40  ;;  %v489_v43 = vsub.f32 %v2582_v21, %v2560_v7 }
  0xe8   : > { %2578 = vst [vmem:[#allocation11_spill] sm:$0xff] %v2114_v28  ;;  %v490_v54 = vsub.f32 %v2582_v21, %v2561_v16  ;;  %v491_v6 = vsub.f32 %v2582_v21, %v2562_v35  ;;  %v608_v18 = vsub.f32 %v530_v57, %v2563_v53  ;;  %v609_v33 = vsub.f32 %v530_v57, %v2564_v24  ;;  %v2586_v21 = vld [vmem:[#allocation53_spill] sm:$0xff] }
  0xe9   : > { %2579 = vst [vmem:[#allocation12_spill] sm:$0xff] %v2116_v44  ;;  %v1147_v29 = vmin.f32 %v1146_v19, %v2114_v28  ;;  %v610_v32 = vsub.f32 %v530_v57, %v2565_v56  ;;  %v611_v31 = vsub.f32 %v530_v57, %v2566_v20  ;;  %v612_v2 = vsub.f32 %v530_v57, %v2567_v3 }
  0xea   : > { %2580 = vst [vmem:[#allocation33_spill] sm:$0xff] %v2118_v10  ;;  %v613_v36 = vsub.f32 %v530_v57, %v2568_v62  ;;  %v614_v52 = vsub.f32 %v530_v57, %v2569_v0  ;;  %v615_v37 = vsub.f32 %v530_v57, %v2583_v47  ;;  %v672_v13 = vmul.f32 %v2584_v59, %v2584_v59  ;;  %v2587_v57 = vld [vmem:[#allocation54_spill] sm:$0xff] }
  0xeb   : > { %v1148_v34 = vmin.f32 %v1147_v29, %v2116_v44  ;;  %v673_v9 = vmul.f32 %v2585_v41, %v2585_v41  ;;  %v674_v25 = vmul.f32 %v362_v38, %v362_v38  ;;  %v675_v49 = vmul.f32 %v363_v63, %v363_v63 }
  0xec   : > { %v676_v55 = vmul.f32 %v364_v1, %v364_v1  ;;  %v677_v46 = vmul.f32 %v365_v60, %v365_v60  ;;  %v678_v15 = vmul.f32 %v366_v50, %v366_v50  ;;  %v679_v19 = vmul.f32 %v367_v23, %v367_v23 }
  0xed   : > { %v1149_v61 = vmin.f32 %v1148_v34, %v2118_v10  ;;  %v736_v8 = vmul.f32 %v2586_v21, %v2586_v21  ;;  %v737_v29 = vmul.f32 %v2587_v57, %v2587_v57  ;;  %v738_v44 = vmul.f32 %v486_v45, %v486_v45 }
  0xee   : > { %v739_v28 = vmul.f32 %v487_v17, %v487_v17  ;;  %v740_v59 = vmul.f32 %v488_v58, %v488_v58  ;;  %v741_v30 = vmul.f32 %v489_v43, %v489_v43  ;;  %v742_v38 = vmul.f32 %v490_v54, %v490_v54 }
  0xef   : > { %v1150_v41 = vmin.f32 %v1149_v61, %v2120_v51  ;;  %v743_v63 = vmul.f32 %v491_v6, %v491_v6  ;;  %v800_v1 = vadd.f32 %v736_v8, %v672_v13  ;;  %v801_v60 = vadd.f32 %v737_v29, %v673_v9  ;;  %v2589_v13 = vld [vmem:[#allocation9_spill] sm:$0xff] }
  0xf0   : > { %v802_v50 = vadd.f32 %v738_v44, %v674_v25  ;;  %v803_v11 = vadd.f32 %v739_v28, %v675_v49  ;;  %v804_v34 = vadd.f32 %v740_v59, %v676_v55  ;;  %v805_v10 = vadd.f32 %v741_v30, %v677_v46  ;;  %v2588_v30 = vld [vmem:[#allocation23_spill] sm:$0xff]  ;;  %v2594_v49 = vld [vmem:[#allocation44_spill] sm:$0xff]  ;;  %v2595_v55 = vld [vmem:[#allocation45_spill] sm:$0xff] }
  0xf1   : > { %v1151_v23 = vmin.f32 %v1150_v41, %v2122_v5  ;;  %v806_v21 = vadd.f32 %v742_v38, %v678_v15  ;;  %v807_v47 = vadd.f32 %v743_v63, %v679_v19  ;;  %v864_v0 = vmul.f32 %v608_v18, %v608_v18  ;;  %v534_v19 = vpop.permute.xlu1 %533  ;;  %v2597_v59 = vld [vmem:[#allocation48_spill] sm:$0xff]  ;;  %v2598_v38 = vld [vmem:[#allocation10_spill] sm:$0xff] }
  0xf2   : > { %v865_v57 = vmul.f32 %v609_v33, %v609_v33  ;;  %v866_v45 = vmul.f32 %v610_v32, %v610_v32  ;;  %v867_v17 = vmul.f32 %v611_v31, %v611_v31  ;;  %v868_v58 = vmul.f32 %v612_v2, %v612_v2 }
  0xf3   : > { %1152 = vmin.xlane.f32.xlu1 %v1151_v23  ;;  %v869_v43 = vmul.f32 %v613_v36, %v613_v36  ;;  %v870_v61 = vmul.f32 %v614_v52, %v614_v52  ;;  %v871_v54 = vmul.f32 %v615_v37, %v615_v37  ;;  %v2172_v6 = vadd.f32 %v864_v0, %v800_v1  ;;  %v2591_v36 = vld [vmem:[#allocation41_spill] sm:$0xff] }
  0xf4   : > { %v2174_v8 = vadd.f32 %v865_v57, %v801_v60  ;;  %v2176_v28 = vadd.f32 %v866_v45, %v802_v50  ;;  %v2178_v44 = vadd.f32 %v867_v17, %v803_v11  ;;  %v2590_v18 = vmin.f32 %v2588_v30, %v2589_v13  ;;  %v2592_v11 = vld [vmem:[#allocation42_spill] sm:$0xff]  ;;  %v2599_v57 = vld [vmem:[#allocation55_spill] sm:$0xff]  ;;  %v2603_v13 = vld [vmem:[#allocation32_spill] sm:$0xff] }
  0xf5   : > { %v2186_v32 = vadd.f32 %v868_v58, %v804_v34  ;;  %v2188_v31 = vadd.f32 %v869_v43, %v805_v10  ;;  %v2190_v2 = vadd.f32 %v870_v61, %v806_v21  ;;  %v2192_v0 = vadd.f32 %v871_v54, %v807_v47  ;;  %v2596_v47 = vld [vmem:[#allocation46_spill] sm:$0xff]  ;;  %v2600_v43 = vld [vmem:[#allocation29_spill] sm:$0xff]  ;;  %v2602_v30 = vld [vmem:[#allocation31_spill] sm:$0xff] }
  0xf6   : > { %v2184_v33 = vmin.f32 %v2590_v18, %v2035_v42  ;;  %v969_v52 = vmin.f32 %v2591_v36, %v2174_v8  ;;  %v1127_v9 = vmin.f32 %v2172_v6, %v2174_v8  ;;  %v2593_v42 = vld [vmem:[#allocation43_spill] sm:$0xff]  ;;  %v956_v41 = vmin.f32 %v2597_v59, %v2172_v6 }
  0xf7   : > { %v370_v63 = vsub.f32 %v2598_v38, %v2474_v14  ;;  %v371_v1 = vsub.f32 %v2598_v38, %v2476_v26  ;;  %v372_v60 = vsub.f32 %v2598_v38, %v2513_v27  ;;  %v373_v50 = vsub.f32 %v2598_v38, %v2514_v22 }
  0xf8   : > { %v1128_v29 = vmin.f32 %v1127_v9, %v2176_v28  ;;  %v374_v34 = vsub.f32 %v2598_v38, %v2554_v12  ;;  %v375_v23 = vsub.f32 %v2598_v38, %v2555_v4  ;;  %v494_v14 = vsub.f32 %v2599_v57, %v2556_v39  ;;  %v2604_v38 = vld [vmem:[#allocation56_spill] sm:$0xff] }
  0xf9   : > { %v495_v26 = vsub.f32 %v2599_v57, %v2558_v48  ;;  %v496_v27 = vsub.f32 %v2599_v57, %v2559_v40  ;;  %v497_v22 = vsub.f32 %v2599_v57, %v2560_v7  ;;  %v498_v12 = vsub.f32 %v2599_v57, %v2561_v16  ;;  %v2601_v16 = vld [vmem:[#allocation30_spill] sm:$0xff] }
  0xfa   : > { %v1129_v21 = vmin.f32 %v1128_v29, %v2178_v44  ;;  %v499_v4 = vsub.f32 %v2599_v57, %v2562_v35  ;;  %v616_v45 = vsub.f32 %v534_v19, %v2563_v53  ;;  %v617_v39 = vsub.f32 %v534_v19, %v2564_v24 }
  0xfb   : > { %v618_v48 = vsub.f32 %v534_v19, %v2565_v56  ;;  %v619_v58 = vsub.f32 %v534_v19, %v2566_v20  ;;  %v620_v40 = vsub.f32 %v534_v19, %v2567_v3  ;;  %v621_v7 = vsub.f32 %v534_v19, %v2568_v62 }
  0xfc   : > { %v1130_v17 = vmin.f32 %v1129_v21, %v2186_v32  ;;  %v622_v61 = vsub.f32 %v534_v19, %v2600_v43  ;;  %v623_v54 = vsub.f32 %v534_v19, %v2601_v16  ;;  %v680_v53 = vmul.f32 %v2602_v30, %v2602_v30  ;;  %v2605_v19 = vld [vmem:[#allocation57_spill] sm:$0xff] }
  0xfd   : > { %v681_v24 = vmul.f32 %v2603_v13, %v2603_v13  ;;  %v682_v18 = vmul.f32 %v370_v63, %v370_v63  ;;  %v683_v56 = vmul.f32 %v371_v1, %v371_v1  ;;  %v684_v9 = vmul.f32 %v372_v60, %v372_v60 }
  0xfe   : > { %v1131_v35 = vmin.f32 %v1130_v17, %v2188_v31  ;;  %v685_v20 = vmul.f32 %v373_v50, %v373_v50  ;;  %v686_v29 = vmul.f32 %v374_v34, %v374_v34  ;;  %v687_v62 = vmul.f32 %v375_v23, %v375_v23 }
  0xff   : > { %v744_v21 = vmul.f32 %v2604_v38, %v2604_v38  ;;  %v745_v57 = vmul.f32 %v2605_v19, %v2605_v19  ;;  %v746_v17 = vmul.f32 %v494_v14, %v494_v14  ;;  %v747_v43 = vmul.f32 %v495_v26, %v495_v26 }
 0x100   : > { %v1132_v3 = vmin.f32 %v1131_v35, %v2190_v2  ;;  %v748_v16 = vmul.f32 %v496_v27, %v496_v27  ;;  %v749_v30 = vmul.f32 %v497_v22, %v497_v22  ;;  %v750_v63 = vmul.f32 %v498_v12, %v498_v12 }
 0x101   : > { %v751_v1 = vmul.f32 %v499_v4, %v499_v4  ;;  %v808_v60 = vadd.f32 %v744_v21, %v680_v53  ;;  %v809_v50 = vadd.f32 %v745_v57, %v681_v24  ;;  %v810_v34 = vadd.f32 %v746_v17, %v682_v18  ;;  %v2616_v21 = vld [vmem:[#allocation14_spill] sm:$0xff] }
 0x102   : > { %v1133_v13 = vmin.f32 %v1132_v3, %v2192_v0  ;;  %v811_v15 = vadd.f32 %v747_v43, %v683_v56  ;;  %v812_v35 = vadd.f32 %v748_v16, %v684_v9  ;;  %v813_v23 = vadd.f32 %v749_v30, %v685_v20 }
 0x103   : > { %v814_v46 = vadd.f32 %v750_v63, %v686_v29  ;;  %v815_v38 = vadd.f32 %v751_v1, %v687_v62  ;;  %v872_v10 = vmul.f32 %v616_v45, %v616_v45  ;;  %v873_v25 = vmul.f32 %v617_v39, %v617_v39 }
 0x104   : > { %1134 = vmin.xlane.f32.xlu2 %v1133_v13  ;;  %v874_v19 = vmul.f32 %v618_v48, %v618_v48  ;;  %v875_v14 = vmul.f32 %v619_v58, %v619_v58  ;;  %v876_v26 = vmul.f32 %v620_v40, %v620_v40  ;;  %v877_v27 = vmul.f32 %v621_v7, %v621_v7  ;;  %v2615_v40 = vld [vmem:[#allocation33_spill] sm:$0xff] }
 0x105   : > { %v878_v22 = vmul.f32 %v622_v61, %v622_v61  ;;  %v879_v37 = vmul.f32 %v623_v54, %v623_v54  ;;  %v936_v3 = vadd.f32 %v872_v10, %v808_v60  ;;  %v937_v12 = vadd.f32 %v873_v25, %v809_v50 }
 0x106   : > { %v938_v4 = vadd.f32 %v874_v19, %v810_v34  ;;  %v939_v53 = vadd.f32 %v875_v14, %v811_v15  ;;  %v940_v24 = vadd.f32 %v876_v26, %v812_v35  ;;  %v941_v18 = vadd.f32 %v877_v27, %v813_v23 }
 0x107   : > { %v942_v56 = vadd.f32 %v878_v22, %v814_v46  ;;  %v943_v9 = vadd.f32 %v879_v37, %v815_v38  ;;  %v957_v20 = vmin.f32 %v956_v41, %v936_v3  ;;  %v970_v45 = vmin.f32 %v969_v52, %v937_v12  ;;  %v2613_v41 = vld [vmem:[#allocation11_spill] sm:$0xff] }
 0x108   : > { %v2606_v39 = vmin.f32 %v2592_v11, %v2176_v28  ;;  %v2607_v25 = vmin.f32 %v2593_v42, %v2178_v44  ;;  %v2608_v46 = vmin.f32 %v2594_v49, %v2186_v32  ;;  %v1047_v6 = vmin.f32 %v2184_v33, %v2192_v0  ;;  %v2611_v11 = vld [vmem:[#allocation40_spill] sm:$0xff]  ;;  %v2612_v44 = vld [vmem:[#allocation49_spill] sm:$0xff] }
 0x109   : > { %v2609_v15 = vmin.f32 %v2595_v55, %v2188_v31  ;;  %v2610_v36 = vmin.f32 %v2596_v47, %v2190_v2  ;;  %v1136_v52 = vmin.f32 %v936_v3, %v937_v12  ;;  %v971_v59 = vmin.f32 %v970_v45, %v2611_v11  ;;  %v2614_v32 = vld [vmem:[#allocation12_spill] sm:$0xff] }
 0x10a   : > { %v983_v48 = vmin.f32 %v2606_v39, %v938_v4  ;;  %v996_v10 = vmin.f32 %v2607_v25, %v939_v53  ;;  %v1009_v37 = vmin.f32 %v2608_v46, %v940_v24  ;;  %v1048_v0 = vmin.f32 %v1047_v6, %v943_v9 }
 0x10b   : > { %v1022_v8 = vmin.f32 %v2609_v15, %v941_v18  ;;  %v1035_v28 = vmin.f32 %v2610_v36, %v942_v56  ;;  %v1137_v31 = vmin.f32 %v1136_v52, %v938_v4  ;;  %v972_v55 = vrot.slane %v971_v59, 4 }
 0x10c   : > { %v984_v42 = vmin.f32 %v983_v48, %v2612_v44  ;;  %v997_v58 = vmin.f32 %v996_v10, %v2613_v41  ;;  %v1010_v49 = vmin.f32 %v1009_v37, %v2614_v32  ;;  %v958_v57 = vmin.f32 %v957_v20, %v2616_v21 }
 0x10d   : > { %v1023_v7 = vmin.f32 %v1022_v8, %v2615_v40  ;;  %v1036_v33 = vmin.f32 %v1035_v28, %v2120_v51  ;;  %v1138_v62 = vmin.f32 %v1137_v31, %v939_v53  ;;  %v973_v17 = vmin.f32 %v971_v59, %v972_v55 }
 0x10e   : > { %v985_v61 = vrot.slane %v984_v42, 4  ;;  %v998_v54 = vrot.slane %v997_v58, 4  ;;  %v1011_v2 = vrot.slane %v1010_v49, 4  ;;  %v1049_v30 = vmin.f32 %v1048_v0, %v2122_v5 }
 0x10f   : > { %v1024_v47 = vrot.slane %v1023_v7, 4  ;;  %v1037_v29 = vrot.slane %v1036_v33, 4  ;;  %v1139_v13 = vmin.f32 %v1138_v62, %v940_v24  ;;  %v959_v51 = vrot.slane %v958_v57, 4 }
 0x110   : > { %v986_v43 = vmin.f32 %v984_v42, %v985_v61  ;;  %v999_v16 = vmin.f32 %v997_v58, %v998_v54  ;;  %v1012_v63 = vmin.f32 %v1010_v49, %v1011_v2  ;;  %v974_v60 = vrot.slane %v973_v17, 2 }
 0x111   : > { %v1025_v1 = vmin.f32 %v1023_v7, %v1024_v47  ;;  %v1140_v35 = vmin.f32 %v1139_v13, %v941_v18  ;;  %v1038_v23 = vmin.f32 %v1036_v33, %v1037_v29  ;;  %v960_v38 = vmin.f32 %v958_v57, %v959_v51 }
 0x112   : > { %v987_v50 = vrot.slane %v986_v43, 2  ;;  %v1000_v34 = vrot.slane %v999_v16, 2  ;;  %v975_v19 = vmin.f32 %v973_v17, %v974_v60  ;;  %v1013_v26 = vrot.slane %v1012_v63, 2 }
 0x113   : > { %v1050_v27 = vrot.slane %v1049_v30, 4  ;;  %v1141_v22 = vmin.f32 %v1140_v35, %v942_v56  ;;  %v961_v3 = vrot.slane %v960_v38, 2  ;;  %v1026_v53 = vrot.slane %v1025_v1, 2 }
 0x114   : > { %v988_v14 = vmin.f32 %v986_v43, %v987_v50  ;;  %v976_v12 = vrot.slane %v975_v19, 1  ;;  %v1001_v4 = vmin.f32 %v999_v16, %v1000_v34  ;;  %v1039_v24 = vrot.slane %v1038_v23, 2 }
 0x115   : > { %v1142_v5 = vmin.f32 %v1141_v22, %v943_v9  ;;  %v962_v20 = vmin.f32 %v960_v38, %v961_v3  ;;  %v1014_v48 = vmin.f32 %v1012_v63, %v1013_v26  ;;  %v1051_v25 = vmin.f32 %v1049_v30, %v1050_v27  ;;  %v1108_v30 = vpop.xlane.xlu0 %1107 }
 0x116   : > { %v977_v45 = vmin.f32 %v975_v19, %v976_v12  ;;  %v989_v39 = vrot.slane %v988_v14, 1  ;;  %v1002_v10 = vrot.slane %v1001_v4, 1  ;;  %v1027_v46 = vmin.f32 %v1025_v1, %v1026_v53 }
 0x117   : > { %1143 = vmin.xlane.f32.xlu0 %v1142_v5  ;;  %v963_v18 = vrot.slane %v962_v20, 1  ;;  %v1040_v37 = vmin.f32 %v1038_v23, %v1039_v24  ;;  %v1052_v6 = vrot.slane %v1051_v25, 2  ;;  %v1015_v8 = vrot.slane %v1014_v48, 1 }
 0x118   : > { %v990_v56 = vmin.f32 %v988_v14, %v989_v39  ;;  %v1058_v36 = vsel %vm1056_vm0, %v977_v45, 0.0  ;;  %v1003_v28 = vmin.f32 %v1001_v4, %v1002_v10  ;;  %v1028_v9 = vrot.slane %v1027_v46, 1 }
 0x119   : > { %v964_v15 = vmin.f32 %v962_v20, %v963_v18  ;;  %v1053_v52 = vmin.f32 %v1051_v25, %v1052_v6  ;;  %v1016_v44 = vmin.f32 %v1014_v48, %v1015_v8  ;;  %v1041_v42 = vrot.slane %v1040_v37, 1 }
 0x11a   : > { %v1060_v41 = vsel %vm1056_vm0, %v990_v56, 0.0  ;;  %v1029_v32 = vmin.f32 %v1027_v46, %v1028_v9  ;;  %v1062_v40 = vsel %vm1056_vm0, %v1003_v28, 0.0  ;;  %v1166_v63 = vsel %vm1162_vm1, %v1108_v30, 0.0 }
 0x11b   : > { %v1057_v11 = vsel %vm1056_vm0, %v964_v15, 0.0  ;;  %v1054_v49 = vrot.slane %v1053_v52, 1  ;;  %v1042_v33 = vmin.f32 %v1040_v37, %v1041_v42  ;;  %v1064_v0 = vsel %vm1056_vm0, %v1016_v44, 0.0  ;;  %v1099_v21 = vpop.xlane.xlu2 %1098 }
 0x11c   : > { %v1059_v59 = vadd.f32 %v1058_v36, %v1057_v11  ;;  %v1066_v61 = vsel %vm1056_vm0, %v1029_v32, 0.0  ;;  %v1164_v16 = vsel %vm1162_vm1, %v1099_v21, 0.0 }
 0x11d   : > { %v1055_v55 = vmin.f32 %v1053_v52, %v1054_v49  ;;  %v1068_v2 = vsel %vm1056_vm0, %v1042_v33, 0.0 }
 0x11e   : > { %v1061_v58 = vadd.f32 %v1060_v41, %v1059_v59 }
 0x11f   : > { %v1070_v29 = vsel %vm1056_vm0, %v1055_v55, 0.0 }
 0x120   : > { %v1063_v7 = vadd.f32 %v1062_v40, %v1061_v58 }
 0x122   : > { %v1065_v31 = vadd.f32 %v1064_v0, %v1063_v7 }
 0x124   : > { %v1067_v54 = vadd.f32 %v1066_v61, %v1065_v31 }
 0x126   : > { %v1069_v47 = vadd.f32 %v1068_v2, %v1067_v54 }
 0x128   : > { %v1071_v62 = vadd.f32 %v1070_v29, %v1069_v47 }
 0x12a   : > { %1072 = vadd.xlane.f32.xlu2 %v1071_v62  ;;  %v1090_v57 = vpop.xlane.xlu1 %1089 }
 0x12b   : > { %v1163_v17 = vsel %vm1162_vm1, %v1090_v57, 0.0 }
 0x12c   : > { %v1165_v13 = vadd.f32 %v1164_v16, %v1163_v17 }
 0x12e   : > { %v1167_v1 = vadd.f32 %v1166_v63, %v1165_v13 }
 0x13e   : > { %v1117_v43 = vpop.xlane.xlu2 %1116 }
 0x13f   : > { %v1168_v60 = vsel %vm1162_vm1, %v1117_v43, 0.0 }
 0x140   : > { %v1169_v35 = vadd.f32 %v1168_v60, %v1167_v1 }
 0x152   : > { %v1126_v51 = vpop.xlane.xlu1 %1125 }
 0x153   : > { %v1170_v34 = vsel %vm1162_vm1, %v1126_v51, 0.0 }
 0x154   : > { %v1171_v38 = vadd.f32 %v1170_v34, %v1169_v35 }
 0x166   : > { %v1153_v19 = vpop.xlane.xlu1 %1152 }
 0x167   : > { %v1176_v3 = vsel %vm1162_vm1, %v1153_v19, 0.0 }
 0x177   : > { %v1135_v50 = vpop.xlane.xlu2 %1134 }
 0x178   : > { %v1172_v23 = vsel %vm1162_vm1, %v1135_v50, 0.0 }
 0x179   : > { %v1173_v14 = vadd.f32 %v1172_v23, %v1171_v38 }
 0x18a   : > { %v1144_v26 = vpop.xlane.xlu0 %1143 }
 0x18b   : > { %v1174_v27 = vsel %vm1162_vm1, %v1144_v26, 0.0 }
 0x18c   : > { %v1175_v22 = vadd.f32 %v1174_v27, %v1173_v14 }
 0x18e   : > { %v1177_v12 = vadd.f32 %v1176_v3, %v1175_v22 }
 0x190   : > { %1178 = vadd.xlane.f32.xlu0 %v1177_v12 }
 0x19d   : > { %v1073_v4 = vpop.xlane.xlu2 %1072 }
 0x19e   : > { %v1074_v53 = vrot.slane %v1073_v4, 4 }
 0x1a0   : > { %v1075_v5 = vadd.f32 %v1074_v53, %v1073_v4 }
 0x1a2   : > { %v1076_v24 = vrot.slane %v1075_v5, 2 }
 0x1a4   : > { %v1077_v20 = vadd.f32 %v1076_v24, %v1075_v5 }
 0x1a6   : > { %v1078_v45 = vrot.slane %v1077_v20, 1 }
 0x1a8   : > { %v1079_v39 = vadd.f32 %v1078_v45, %v1077_v20 }
 0x1aa   : > { %1242 = vpush %v1079_v39 }
 0x1db   : > { %s1243_s21 = spop %1242 }
 0x1dc   : > { %s1081_s26 = smul.f32 0.0009765625, %s1243_s21 }
 0x203   : > { %v1179_v48 = vpop.xlane.xlu0 %1178 }
 0x204   : > { %v1180_v25 = vrot.slane %v1179_v48, 4 }
 0x206   : > { %v1181_v18 = vadd.f32 %v1180_v25, %v1179_v48 }
 0x208   : > { %v1182_v10 = vrot.slane %v1181_v18, 2 }
 0x20a   : > { %v1183_v46 = vadd.f32 %v1182_v10, %v1181_v18 }
 0x20c   : > { %v1184_v37 = vrot.slane %v1183_v46, 1 }
 0x20e   : > { %v1185_v6 = vadd.f32 %v1184_v37, %v1183_v46 }
 0x210   : > { %1244 = vpush %v1185_v6 }
 0x241   : > { %s1245_s27 = spop %1244 }
 0x242   : > { %s1187_s28 = smul.f32 0.015625, %s1245_s27 }
 0x244   : > { %s1188_s29 = sadd.f32 %s1187_s28, %s1081_s26  ;;  %49 = sbr.rel (!%p47_p0) target bundleno = 7 (0x7), region = 46 }
 0x246   : > { %s1189_s30 = sadd.f32 %s1321_s16, %s1188_s29  }
 0x248   : > { %s2617_s16 = smov %s1189_s30  ;;  %s1190_s4 = smul.f32 (%p47_p0), 0.5, %s1189_s30 }
 0x24a   :  { %1192 = sst [smem:[#allocation5]] %s1190_s4 }
 0x24b   :  { %1201 = dma.smem_to_hbm %s1331_s8, 16, %s1199_s7, [#allocation3]  }
 0x24c   :  { %1317 = dma.done.wait [#allocation3], 16  }
 0x24d   :  { %1318 = vsyncadd [#allocation3], 4294967280 }
 0x24e   :  { %1206 = sfence }
 0x24f   :  { %1207 = vsyncpa [#allocation3], 1 }
 0x250   :  { %1208 = vsyncpa [#allocation4], 1 }

</bundles_post_ra>
